<compile_context>
chip_gen: v5e
topology: v5e:2x2
jax: 0.10.0
libtpu: 0.0.40
codegen_flags: <defaults>
</compile_context>

<pallas_src>
import functools

import numpy as np
import jax
import jax.numpy as jnp
from jax import lax
from jax.experimental import pallas as pl
from jax.experimental.pallas import tpu as pltpu


# ----------------------- model hyper-parameters (config) --------------------
NODE_FEAT_DIM = 8      # input_dim
EDGE_FEAT_DIM = 4
NODE_STATE_DIM = 32
EDGE_STATE_DIM = 16
MSG_HIDDEN_DIM = 64
GRAPH_STATE_DIM = 48   # aggregator._graph_state_dim (gated -> MLP1 out = 2x)
N_PROP_LAYERS = 3
MAX_QUERY_SUBGRAPH_SIZE = 8
MAX_CORPUS_SUBGRAPH_SIZE = 16
MAX_SET_SIZE = max(MAX_QUERY_SUBGRAPH_SIZE, MAX_CORPUS_SUBGRAPH_SIZE)

FEAT_COLS = max(NODE_FEAT_DIM, EDGE_FEAT_DIM)   # node/edge feature slab width
SLAB_COLS = MSG_HIDDEN_DIM                      # widest weight output dim (64)

# weight-slab row offsets (all multiples of 8; cols padded to SLAB_COLS)
_WS_EN = 0                                       # [8, 32]
_WS_EE = _WS_EN + 8                              # [8, 16] (4 real + 4 zero rows)
_WS_M1F = _WS_EE + 8                             # [32, 64]
_WS_M1T = _WS_M1F + NODE_STATE_DIM               # [32, 64]
_WS_M1E = _WS_M1T + NODE_STATE_DIM               # [16, 64]
_WS_M2 = _WS_M1E + EDGE_STATE_DIM                # [64, 64]
_WS_U1A = _WS_M2 + MSG_HIDDEN_DIM                # [64, 64]
_WS_U1H = _WS_U1A + MSG_HIDDEN_DIM               # [32, 64]
_WS_U2 = _WS_U1H + NODE_STATE_DIM                # [64, 32]
_WS_AG = _WS_U2 + MSG_HIDDEN_DIM                 # [32, 48]
_WS_AV = _WS_AG + NODE_STATE_DIM                 # [32, 48]
_WS_ROWS = _WS_AV + NODE_STATE_DIM               # 384


def _round_up(x, m):
    return ((x + m - 1) // m) * m


def _compute_dtype():
    """bf16 MXU operands on v6e/v7x (per review); f32 on v5e and older."""
    try:
        kind = jax.devices()[0].device_kind.lower()
    except Exception:
        return jnp.float32
    if "v6" in kind or "v7" in kind:
        return jnp.bfloat16
    return jnp.float32


# --------------------------- fused Pallas kernel -----------------------------
def _fused_forward_kernel(
    feat_ref,        # [n_pad + e_pad, FEAT_COLS]  node + edge raw features
    gboth_ref,       # [2*e_pad, n_pad]            [one_hot(from); one_hot(to)]
    sboth_ref,       # [n_pad, 2*e_pad]            [sto | sfrom]
    qcsel_ref,       # [2*B*M, n_pad]              stacked query/corpus selection
    maskbias_ref,    # [B*M, B*M]                  additive mask (0 or -1e30)
    pairsum_ref,     # [B, B*M]                    per-pair row-sum matrix
    w_ref,           # [_WS_ROWS, SLAB_COLS]       consolidated weight slab
    b_ref,           # [8, SLAB_COLS]              consolidated bias slab (f32)
    o_ref,           # [B, 1]                      output
    *, n_pad, e_pad, bm, n_prop_layers, compute_dtype,
):
    f32 = jnp.float32
    cdt = compute_dtype
    NS, ES, MH, GS = NODE_STATE_DIM, EDGE_STATE_DIM, MSG_HIDDEN_DIM, GRAPH_STATE_DIM

    def dot(a, b):
        return jnp.dot(a, b, preferred_element_type=f32)

    # --- static, 8-aligned slices of the consolidated weight/bias slabs ---
    w_en = w_ref[_WS_EN:_WS_EN + 8, :NS]
    w_ee = w_ref[_WS_EE:_WS_EE + 8, :ES]
    w_m1f = w_ref[_WS_M1F:_WS_M1F + NS, :MH]
    w_m1t = w_ref[_WS_M1T:_WS_M1T + NS, :MH]
    w_m1e = w_ref[_WS_M1E:_WS_M1E + ES, :MH]
    w_m2 = w_ref[_WS_M2:_WS_M2 + MH, :MH]
    w_u1a = w_ref[_WS_U1A:_WS_U1A + MH, :MH]
    w_u1h = w_ref[_WS_U1H:_WS_U1H + NS, :MH]
    w_u2 = w_ref[_WS_U2:_WS_U2 + MH, :NS]
    w_ag = w_ref[_WS_AG:_WS_AG + NS, :GS]
    w_av = w_ref[_WS_AV:_WS_AV + NS, :GS]

    b_en = b_ref[0:1, :NS]
    b_ee = b_ref[1:2, :ES]
    b_m1 = b_ref[2:3, :MH]
    b_m2 = b_ref[3:4, :MH]
    b_u1 = b_ref[4:5, :MH]
    b_u2 = b_ref[5:6, :NS]
    b_ag = b_ref[6:7, :GS]
    b_av = b_ref[7:8, :GS]

    nf = feat_ref[0:n_pad, :]
    ef = feat_ref[n_pad:n_pad + e_pad, :]

    # ---- encoder ----
    h = dot(nf, w_en) + b_en                              # [N, 32]  f32
    e = dot(ef, w_ee) + b_ee                              # [E, 16]  f32

    gboth = gboth_ref[...]                                # [2E, N]
    sboth = sboth_ref[...]                                # [N, 2E]

    # Edge slab of the message-net input is layer/direction invariant:
    # compute once and tile to both directions.
    e_msg = dot(e.astype(cdt), w_m1e) + b_m1              # [E, 64]
    e_msg2 = jnp.concatenate([e_msg, e_msg], axis=0)      # [2E, 64]

    # ---- propagation layers (shared params, residual update, fused dirs) ----
    for _ in range(n_prop_layers):
        hc = h.astype(cdt)
        x = dot(gboth, hc)                                # [2E, 32] = [from; to]
        # swap halves -> [to; from]  (whole-vreg sublane roll, XLU slot)
        x_sw = pltpu.roll(x, shift=e_pad, axis=0)
        m = jnp.maximum(dot(x.astype(cdt), w_m1f)
                        + dot(x_sw.astype(cdt), w_m1t) + e_msg2, 0.0)
        m = dot(m.astype(cdt), w_m2) + b_m2               # [2E, 64] fwd|rev msgs
        agg = dot(sboth, m.astype(cdt))                   # [N, 64] both scatters
        u = jnp.maximum(dot(agg.astype(cdt), w_u1a) + dot(hc, w_u1h) + b_u1, 0.0)
        u = dot(u.astype(cdt), w_u2) + b_u2
        h = h + u

    # ---- gated aggregator MLP1 (gate / value slabs) ----
    hc = h.astype(cdt)
    gate = dot(hc, w_ag) + b_ag                           # [N, 48]
    val = dot(hc, w_av) + b_av                            # [N, 48]
    gates = pl.reciprocal(1.0 + jnp.exp(-gate), approx=True)   # sigmoid (EUP)
    h_g = val * gates                                     # [N, 48]

    # ---- split / pad / stack via one stacked selection matmul ----
    qc = dot(qcsel_ref[...], h_g.astype(cdt))             # [2*B*M, 48]
    q_flat = qc[0:bm]                                     # [B*M, 48]
    c_flat = qc[bm:]                                      # [B*M, 48]

    # ---- batched maxsim scoring: one big matmul, block-diagonal mask ----
    s = lax.dot_general(q_flat.astype(cdt), c_flat.astype(cdt),
                        (((1,), (1,)), ((), ())),
                        preferred_element_type=f32)       # [B*M, B*M]
    s = s + maskbias_ref[...]                             # -1e30 outside own pair
    row_max = jnp.max(s, axis=-1, keepdims=True)          # [B*M, 1]
    o_ref[...] = dot(pairsum_ref[...], row_max)           # [B, 1] per-pair sums


def forward_pallas_fused(params, node_features, edge_features,
                         from_idx, to_idx, batch_data_sizes):
    cdt = _compute_dtype()
    n_total = node_features.shape[0]
    n_edges = edge_features.shape[0]
    B = len(batch_data_sizes)
    M = MAX_SET_SIZE
    BM = B * M

    n_pad = _round_up(n_total, 8)
    e_pad = _round_up(n_edges, 8)

    # --- features: one [n_pad + e_pad, FEAT_COLS] slab ---
    nf = jnp.pad(node_features,
                 ((0, n_pad - n_total), (0, FEAT_COLS - NODE_FEAT_DIM)))
    ef = jnp.pad(edge_features,
                 ((0, e_pad - n_edges), (0, FEAT_COLS - EDGE_FEAT_DIM)))
    feat = jnp.concatenate([nf, ef], axis=0).astype(cdt)

    # --- stacked gather / scatter matrices (padded edge rows/cols are zero) ---
    gfrom = jnp.pad(jax.nn.one_hot(from_idx, n_pad, dtype=jnp.float32),
                    ((0, e_pad - n_edges), (0, 0)))
    gto = jnp.pad(jax.nn.one_hot(to_idx, n_pad, dtype=jnp.float32),
                  ((0, e_pad - n_edges), (0, 0)))
    gboth = jnp.concatenate([gfrom, gto], axis=0).astype(cdt)      # [2E, N]
    sboth = jnp.concatenate([gto.T, gfrom.T], axis=1).astype(cdt)  # [N, 2E]

    # --- stacked selection matrix, mask bias, per-pair row-sum (all static) ---
    sizes = [int(s) for pair in batch_data_sizes for s in pair]
    offsets = np.cumsum([0] + sizes)
    qcsel_np = np.zeros((2 * BM, n_pad), np.float32)
    maskbias_np = np.zeros((BM, BM), np.float32)
    pairsum_np = np.zeros((B, BM), np.float32)
    NEG = -1e30   # finite stand-in for -inf: keeps the pair-sum matmul NaN-free
    for b, (qs, cs) in enumerate(batch_data_sizes):
        qs, cs = int(qs), int(cs)
        qoff = int(offsets[2 * b])
        coff = int(offsets[2 * b + 1])
        for i in range(qs):
            qcsel_np[b * M + i, qoff + i] = 1.0
        for i in range(cs):
            qcsel_np[BM + b * M + i, coff + i] = 1.0
        pairsum_np[b, b * M:(b + 1) * M] = 1.0
        for i in range(qs):                  # valid query rows only
            r = b * M + i
            maskbias_np[r, :] = NEG                          # mask everything...
            maskbias_np[r, b * M:b * M + cs] = 0.0           # ...but own valid cols
    qcsel = jnp.asarray(qcsel_np).astype(cdt)
    maskbias = jnp.asarray(maskbias_np)
    pairsum = jnp.asarray(pairsum_np)

    # --- consolidated weight / bias slabs ---
    w_en, b_en = params["enc_node"]
    w_ee, b_ee = params["enc_edge"]
    w_m1, b_m1 = params["msg1"]
    w_m1f = w_m1[:NODE_STATE_DIM]
    w_m1t = w_m1[NODE_STATE_DIM:2 * NODE_STATE_DIM]
    w_m1e = w_m1[2 * NODE_STATE_DIM:]
    w_m2, b_m2 = params["msg2"]
    w_u1, b_u1 = params["upd1"]
    w_u1a = w_u1[:MSG_HIDDEN_DIM]
    w_u1h = w_u1[MSG_HIDDEN_DIM:]
    w_u2, b_u2 = params["upd2"]
    w_agg, b_agg = params["agg"]
    w_ag, w_av = w_agg[:, :GRAPH_STATE_DIM], w_agg[:, GRAPH_STATE_DIM:]
    b_ag, b_av = b_agg[:GRAPH_STATE_DIM], b_agg[GRAPH_STATE_DIM:]

    def wblock(w, rows):
        return jnp.pad(w, ((0, rows - w.shape[0]), (0, SLAB_COLS - w.shape[1])))

    w_slab = jnp.concatenate([
        wblock(w_en, 8), wblock(w_ee, 8),
        wblock(w_m1f, NODE_STATE_DIM), wblock(w_m1t, NODE_STATE_DIM),
        wblock(w_m1e, EDGE_STATE_DIM), wblock(w_m2, MSG_HIDDEN_DIM),
        wblock(w_u1a, MSG_HIDDEN_DIM), wblock(w_u1h, NODE_STATE_DIM),
        wblock(w_u2, MSG_HIDDEN_DIM), wblock(w_ag, NODE_STATE_DIM),
        wblock(w_av, NODE_STATE_DIM),
    ], axis=0).astype(cdt)                                       # [384, 64]
    assert w_slab.shape[0] == _WS_ROWS

    def brow(b):
        return jnp.pad(b.reshape(1, -1), ((0, 0), (0, SLAB_COLS - b.shape[0])))

    b_slab = jnp.concatenate([brow(b_en), brow(b_ee), brow(b_m1), brow(b_m2),
                              brow(b_u1), brow(b_u2), brow(b_ag), brow(b_av)],
                             axis=0)                             # [8, 64] f32

    vmem = pl.BlockSpec(memory_space=pltpu.MemorySpace.VMEM)
    kernel = functools.partial(
        _fused_forward_kernel, n_pad=n_pad, e_pad=e_pad, bm=BM,
        n_prop_layers=N_PROP_LAYERS, compute_dtype=cdt)

    # Ungridded call: problem fits entirely in VMEM.  If B / batches-per-step
    # grows, add a "parallel" grid axis over pairs so v7x's second TensorCore
    # is used (weights with constant-index BlockSpecs stay VMEM-resident).
    out = pl.pallas_call(
        kernel,
        out_shape=jax.ShapeDtypeStruct((B, 1), jnp.float32),
        in_specs=[vmem] * 8,
        out_specs=vmem,
        compiler_params=pltpu.CompilerParams(
            vmem_limit_bytes=32 * 1024 * 1024),
    )(feat, gboth, sboth, qcsel, maskbias, pairsum, w_slab, b_slab)
    return out.reshape(B)


# --------------------------- pure-JAX reference ------------------------------
def _linear_ref(x, w, b, activation=None):
    y = jnp.dot(x, w, precision=lax.Precision.HIGHEST) + b
    if activation == "relu":
        y = jnp.maximum(y, 0.0)
    return y


def forward_ref(params, node_features, edge_features, from_idx, to_idx,
                batch_data_sizes):
    n_total = node_features.shape[0]

    h = _linear_ref(node_features, *params["enc_node"])
    e = _linear_ref(edge_features, *params["enc_edge"])

    for _ in range(N_PROP_LAYERS):
        from_states = h[from_idx]
        to_states = h[to_idx]

        m_in = jnp.concatenate([from_states, to_states, e], axis=-1)
        m = _linear_ref(m_in, *params["msg1"], activation="relu")
        m = _linear_ref(m, *params["msg2"])
        agg_fwd = jnp.zeros((n_total, MSG_HIDDEN_DIM),
                            m.dtype).at[to_idx].add(m)

        m_in_r = jnp.concatenate([to_states, from_states, e], axis=-1)
        m_r = _linear_ref(m_in_r, *params["msg1"], activation="relu")
        m_r = _linear_ref(m_r, *params["msg2"])
        agg_rev = jnp.zeros((n_total, MSG_HIDDEN_DIM),
                            m_r.dtype).at[from_idx].add(m_r)

        agg = agg_fwd + agg_rev
        u_in = jnp.concatenate([agg, h], axis=-1)
        u = _linear_ref(u_in, *params["upd1"], activation="relu")
        u = _linear_ref(u, *params["upd2"])
        h = h + u

    g = _linear_ref(h, *params["agg"])
    gates = jax.nn.sigmoid(g[:, :GRAPH_STATE_DIM])
    h_g = g[:, GRAPH_STATE_DIM:] * gates

    sizes = [int(s) for pair in batch_data_sizes for s in pair]
    offsets = np.cumsum([0] + sizes)
    chunks = [h_g[offsets[i]:offsets[i + 1]] for i in range(len(sizes))]
    padded = [jnp.pad(c, ((0, MAX_SET_SIZE - c.shape[0]), (0, 0)))
              for c in chunks]
    q_emb = jnp.stack(padded[0::2])
    c_emb = jnp.stack(padded[1::2])
    q_sizes = jnp.array([p[0] for p in batch_data_sizes], jnp.int32)
    c_sizes = jnp.array([p[1] for p in batch_data_sizes], jnp.int32)

    Mss = MAX_SET_SIZE
    scores = jnp.einsum("bid,bjd->bij", q_emb, c_emb,
                        precision=lax.Precision.HIGHEST)
    ar = jnp.arange(Mss)
    qmask = ar[None, :] < q_sizes[:, None]
    cmask = ar[None, :] < c_sizes[:, None]
    mask = qmask[:, :, None] & (~cmask)[:, None, :]
    scores = jnp.where(mask, -jnp.inf, scores)
    return jnp.max(scores, axis=-1).sum(axis=-1)


# ------------------------------- parameters ----------------------------------
def _dense(key, din, dout):
    kw, kb = jax.random.split(key)
    w = jax.random.normal(kw, (din, dout), jnp.float32) / np.sqrt(din)
    b = 0.01 * jax.random.normal(kb, (dout,), jnp.float32)
    return w, b


def init_params(key):
    ks = jax.random.split(key, 8)
    return {
        "enc_node": _dense(ks[0], NODE_FEAT_DIM, NODE_STATE_DIM),
        "enc_edge": _dense(ks[1], EDGE_FEAT_DIM, EDGE_STATE_DIM),
        # message net: [from || to || edge] -> hidden -> hidden
        "msg1": _dense(ks[2], 2 * NODE_STATE_DIM + EDGE_STATE_DIM,
                       MSG_HIDDEN_DIM),
        "msg2": _dense(ks[3], MSG_HIDDEN_DIM, MSG_HIDDEN_DIM),
        # residual node-update MLP: [agg_messages || node_state] -> node_state
        "upd1": _dense(ks[4], MSG_HIDDEN_DIM + NODE_STATE_DIM, MSG_HIDDEN_DIM),
        "upd2": _dense(ks[5], MSG_HIDDEN_DIM, NODE_STATE_DIM),
        # aggregator MLP1 (gated): node_state -> 2 * graph_state_dim
        "agg": _dense(ks[6], NODE_STATE_DIM, 2 * GRAPH_STATE_DIM),
    }


# --------------------------------- main ---------------------------------------
if __name__ == "__main__":
    key = jax.random.PRNGKey(0)
    k_node, k_edge, k_param = jax.random.split(key, 3)

    # batch of 2 (query, corpus) graph pairs
    batch_data_sizes = [(5, 12), (7, 9)]
    sizes = [s for pair in batch_data_sizes for s in pair]
    n_total = int(sum(sizes))

    # deterministic ring edges inside each graph (global node indexing)
    offsets = np.cumsum([0] + sizes)
    from_list, to_list = [], []
    for gi, s in enumerate(sizes):
        base = int(offsets[gi])
        for v in range(s):
            from_list.append(base + v)
            to_list.append(base + (v + 1) % s)
    from_idx = jnp.array(from_list, jnp.int32)
    to_idx = jnp.array(to_list, jnp.int32)
    n_edges = len(from_list)

    node_features = jax.random.normal(k_node, (n_total, NODE_FEAT_DIM),
                                      jnp.float32)
    edge_features = jax.random.normal(k_edge, (n_edges, EDGE_FEAT_DIM),
                                      jnp.float32)
    params = init_params(k_param)

    out = forward_pallas_fused(params, node_features, edge_features,
                               from_idx, to_idx, batch_data_sizes)
    out = jax.block_until_ready(out)

    ref = forward_ref(params, node_features, edge_features,
                      from_idx, to_idx, batch_data_sizes)
    ref = jax.block_until_ready(ref)

    # f32 reference uses HIGHEST precision; loosen tolerance when the kernel
    # runs with bf16 MXU operands (v6e / v7x).
    tol = 5e-2 if _compute_dtype() == jnp.float32 else 1e-1
    np.testing.assert_allclose(np.asarray(out), np.asarray(ref),
                               rtol=tol, atol=tol)
    assert out.shape == (len(batch_data_sizes),)
    print("KERNEL_OK")
</pallas_src>

<mosaic_0001>
module attributes {stable_mosaic.version = 11 : i64} {
  func.func @_fused_forward_kernel(%arg0: memref<80x8xf32, #tpu.memory_space<vmem>>, %arg1: memref<80x40xf32, #tpu.memory_space<vmem>>, %arg2: memref<40x80xf32, #tpu.memory_space<vmem>>, %arg3: memref<64x40xf32, #tpu.memory_space<vmem>>, %arg4: memref<32x32xf32, #tpu.memory_space<vmem>>, %arg5: memref<2x32xf32, #tpu.memory_space<vmem>>, %arg6: memref<384x64xf32, #tpu.memory_space<vmem>>, %arg7: memref<8x64xf32, #tpu.memory_space<vmem>>, %arg8: memref<2x1xf32, #tpu.memory_space<vmem>>) attributes {dimension_semantics = [], scalar_prefetch = 0 : i64, scratch_operands = 0 : i64, tpu.core_type = #tpu.core_type<tc>} {
    %c0 = arith.constant 0 : index
    %c0_0 = arith.constant 0 : index
    %0 = vector.load %arg6[%c0, %c0_0] : memref<384x64xf32, #tpu.memory_space<vmem>>, vector<8x32xf32>
    %c8 = arith.constant 8 : index
    %c0_1 = arith.constant 0 : index
    %1 = vector.load %arg6[%c8, %c0_1] : memref<384x64xf32, #tpu.memory_space<vmem>>, vector<8x16xf32>
    %c16 = arith.constant 16 : index
    %c0_2 = arith.constant 0 : index
    %2 = vector.load %arg6[%c16, %c0_2] : memref<384x64xf32, #tpu.memory_space<vmem>>, vector<32x64xf32>
    %c48 = arith.constant 48 : index
    %c0_3 = arith.constant 0 : index
    %3 = vector.load %arg6[%c48, %c0_3] : memref<384x64xf32, #tpu.memory_space<vmem>>, vector<32x64xf32>
    %c80 = arith.constant 80 : index
    %c0_4 = arith.constant 0 : index
    %4 = vector.load %arg6[%c80, %c0_4] : memref<384x64xf32, #tpu.memory_space<vmem>>, vector<16x64xf32>
    %c96 = arith.constant 96 : index
    %c0_5 = arith.constant 0 : index
    %5 = vector.load %arg6[%c96, %c0_5] : memref<384x64xf32, #tpu.memory_space<vmem>>, vector<64x64xf32>
    %c160 = arith.constant 160 : index
    %c0_6 = arith.constant 0 : index
    %6 = vector.load %arg6[%c160, %c0_6] : memref<384x64xf32, #tpu.memory_space<vmem>>, vector<64x64xf32>
    %c224 = arith.constant 224 : index
    %c0_7 = arith.constant 0 : index
    %7 = vector.load %arg6[%c224, %c0_7] : memref<384x64xf32, #tpu.memory_space<vmem>>, vector<32x64xf32>
    %c256 = arith.constant 256 : index
    %c0_8 = arith.constant 0 : index
    %8 = vector.load %arg6[%c256, %c0_8] : memref<384x64xf32, #tpu.memory_space<vmem>>, vector<64x32xf32>
    %c320 = arith.constant 320 : index
    %c0_9 = arith.constant 0 : index
    %9 = vector.load %arg6[%c320, %c0_9] : memref<384x64xf32, #tpu.memory_space<vmem>>, vector<32x48xf32>
    %c352 = arith.constant 352 : index
    %c0_10 = arith.constant 0 : index
    %10 = vector.load %arg6[%c352, %c0_10] : memref<384x64xf32, #tpu.memory_space<vmem>>, vector<32x48xf32>
    %c0_11 = arith.constant 0 : index
    %c0_12 = arith.constant 0 : index
    %11 = vector.load %arg7[%c0_11, %c0_12] : memref<8x64xf32, #tpu.memory_space<vmem>>, vector<1x32xf32>
    %c1 = arith.constant 1 : index
    %c0_13 = arith.constant 0 : index
    %12 = vector.load %arg7[%c1, %c0_13] : memref<8x64xf32, #tpu.memory_space<vmem>>, vector<1x16xf32>
    %c2 = arith.constant 2 : index
    %c0_14 = arith.constant 0 : index
    %13 = vector.load %arg7[%c2, %c0_14] : memref<8x64xf32, #tpu.memory_space<vmem>>, vector<1x64xf32>
    %c3 = arith.constant 3 : index
    %c0_15 = arith.constant 0 : index
    %14 = vector.load %arg7[%c3, %c0_15] : memref<8x64xf32, #tpu.memory_space<vmem>>, vector<1x64xf32>
    %c4 = arith.constant 4 : index
    %c0_16 = arith.constant 0 : index
    %15 = vector.load %arg7[%c4, %c0_16] : memref<8x64xf32, #tpu.memory_space<vmem>>, vector<1x64xf32>
    %c5 = arith.constant 5 : index
    %c0_17 = arith.constant 0 : index
    %16 = vector.load %arg7[%c5, %c0_17] : memref<8x64xf32, #tpu.memory_space<vmem>>, vector<1x32xf32>
    %c6 = arith.constant 6 : index
    %c0_18 = arith.constant 0 : index
    %17 = vector.load %arg7[%c6, %c0_18] : memref<8x64xf32, #tpu.memory_space<vmem>>, vector<1x48xf32>
    %c7 = arith.constant 7 : index
    %c0_19 = arith.constant 0 : index
    %18 = vector.load %arg7[%c7, %c0_19] : memref<8x64xf32, #tpu.memory_space<vmem>>, vector<1x48xf32>
    %c0_20 = arith.constant 0 : index
    %c0_21 = arith.constant 0 : index
    %19 = vector.load %arg0[%c0_20, %c0_21] : memref<80x8xf32, #tpu.memory_space<vmem>>, vector<40x8xf32>
    %c40 = arith.constant 40 : index
    %c0_22 = arith.constant 0 : index
    %20 = vector.load %arg0[%c40, %c0_22] : memref<80x8xf32, #tpu.memory_space<vmem>>, vector<40x8xf32>
    %cst = arith.constant dense<0.000000e+00> : vector<40x32xf32>
    %21 = tpu.matmul %19, %0, %cst {dimension_numbers = #tpu.dot_dimension_numbers<[1], [0], [0], [1], [0, 0, 1, 1], [], []>} : vector<40x8xf32>, vector<8x32xf32>, vector<40x32xf32> -> vector<40x32xf32>
    %22 = vector.broadcast %11 : vector<1x32xf32> to vector<40x32xf32>
    %23 = arith.addf %21, %22 : vector<40x32xf32>
    %cst_23 = arith.constant dense<0.000000e+00> : vector<40x16xf32>
    %24 = tpu.matmul %20, %1, %cst_23 {dimension_numbers = #tpu.dot_dimension_numbers<[1], [0], [0], [1], [0, 0, 1, 1], [], []>} : vector<40x8xf32>, vector<8x16xf32>, vector<40x16xf32> -> vector<40x16xf32>
    %25 = vector.broadcast %12 : vector<1x16xf32> to vector<40x16xf32>
    %26 = arith.addf %24, %25 : vector<40x16xf32>
    %c0_24 = arith.constant 0 : index
    %c0_25 = arith.constant 0 : index
    %27 = vector.load %arg1[%c0_24, %c0_25] : memref<80x40xf32, #tpu.memory_space<vmem>>, vector<80x40xf32>
    %c0_26 = arith.constant 0 : index
    %c0_27 = arith.constant 0 : index
    %28 = vector.load %arg2[%c0_26, %c0_27] : memref<40x80xf32, #tpu.memory_space<vmem>>, vector<40x80xf32>
    %cst_28 = arith.constant dense<0.000000e+00> : vector<40x64xf32>
    %29 = tpu.matmul %26, %4, %cst_28 {dimension_numbers = #tpu.dot_dimension_numbers<[1], [0], [0], [1], [0, 0, 1, 1], [], []>} : vector<40x16xf32>, vector<16x64xf32>, vector<40x64xf32> -> vector<40x64xf32>
    %30 = vector.broadcast %13 : vector<1x64xf32> to vector<40x64xf32>
    %31 = arith.addf %29, %30 : vector<40x64xf32>
    %32 = tpu.concatenate %31, %31 in 0 : vector<40x64xf32>, vector<40x64xf32> -> vector<80x64xf32>
    %cst_29 = arith.constant dense<0.000000e+00> : vector<80x32xf32>
    %33 = tpu.matmul %27, %23, %cst_29 {dimension_numbers = #tpu.dot_dimension_numbers<[1], [0], [0], [1], [0, 0, 1, 1], [], []>} : vector<80x40xf32>, vector<40x32xf32>, vector<80x32xf32> -> vector<80x32xf32>
    %c40_i32 = arith.constant 40 : i32
    %34 = tpu.dynamic_rotate %33 by %c40_i32 dim 0 : vector<80x32xf32>, i32 -> vector<80x32xf32>
    %cst_30 = arith.constant dense<0.000000e+00> : vector<80x64xf32>
    %35 = tpu.matmul %33, %2, %cst_30 {dimension_numbers = #tpu.dot_dimension_numbers<[1], [0], [0], [1], [0, 0, 1, 1], [], []>} : vector<80x32xf32>, vector<32x64xf32>, vector<80x64xf32> -> vector<80x64xf32>
    %cst_31 = arith.constant dense<0.000000e+00> : vector<80x64xf32>
    %36 = tpu.matmul %34, %3, %cst_31 {dimension_numbers = #tpu.dot_dimension_numbers<[1], [0], [0], [1], [0, 0, 1, 1], [], []>} : vector<80x32xf32>, vector<32x64xf32>, vector<80x64xf32> -> vector<80x64xf32>
    %37 = arith.addf %35, %36 : vector<80x64xf32>
    %38 = arith.addf %37, %32 : vector<80x64xf32>
    %cst_32 = arith.constant 0.000000e+00 : f32
    %39 = vector.broadcast %cst_32 : f32 to vector<80x64xf32>
    %40 = arith.maximumf %38, %39 : vector<80x64xf32>
    %cst_33 = arith.constant dense<0.000000e+00> : vector<80x64xf32>
    %41 = tpu.matmul %40, %5, %cst_33 {dimension_numbers = #tpu.dot_dimension_numbers<[1], [0], [0], [1], [0, 0, 1, 1], [], []>} : vector<80x64xf32>, vector<64x64xf32>, vector<80x64xf32> -> vector<80x64xf32>
    %42 = vector.broadcast %14 : vector<1x64xf32> to vector<80x64xf32>
    %43 = arith.addf %41, %42 : vector<80x64xf32>
    %cst_34 = arith.constant dense<0.000000e+00> : vector<40x64xf32>
    %44 = tpu.matmul %28, %43, %cst_34 {dimension_numbers = #tpu.dot_dimension_numbers<[1], [0], [0], [1], [0, 0, 1, 1], [], []>} : vector<40x80xf32>, vector<80x64xf32>, vector<40x64xf32> -> vector<40x64xf32>
    %cst_35 = arith.constant dense<0.000000e+00> : vector<40x64xf32>
    %45 = tpu.matmul %44, %6, %cst_35 {dimension_numbers = #tpu.dot_dimension_numbers<[1], [0], [0], [1], [0, 0, 1, 1], [], []>} : vector<40x64xf32>, vector<64x64xf32>, vector<40x64xf32> -> vector<40x64xf32>
    %cst_36 = arith.constant dense<0.000000e+00> : vector<40x64xf32>
    %46 = tpu.matmul %23, %7, %cst_36 {dimension_numbers = #tpu.dot_dimension_numbers<[1], [0], [0], [1], [0, 0, 1, 1], [], []>} : vector<40x32xf32>, vector<32x64xf32>, vector<40x64xf32> -> vector<40x64xf32>
    %47 = arith.addf %45, %46 : vector<40x64xf32>
    %48 = vector.broadcast %15 : vector<1x64xf32> to vector<40x64xf32>
    %49 = arith.addf %47, %48 : vector<40x64xf32>
    %cst_37 = arith.constant 0.000000e+00 : f32
    %50 = vector.broadcast %cst_37 : f32 to vector<40x64xf32>
    %51 = arith.maximumf %49, %50 : vector<40x64xf32>
    %cst_38 = arith.constant dense<0.000000e+00> : vector<40x32xf32>
    %52 = tpu.matmul %51, %8, %cst_38 {dimension_numbers = #tpu.dot_dimension_numbers<[1], [0], [0], [1], [0, 0, 1, 1], [], []>} : vector<40x64xf32>, vector<64x32xf32>, vector<40x32xf32> -> vector<40x32xf32>
    %53 = vector.broadcast %16 : vector<1x32xf32> to vector<40x32xf32>
    %54 = arith.addf %52, %53 : vector<40x32xf32>
    %55 = arith.addf %23, %54 : vector<40x32xf32>
    %cst_39 = arith.constant dense<0.000000e+00> : vector<80x32xf32>
    %56 = tpu.matmul %27, %55, %cst_39 {dimension_numbers = #tpu.dot_dimension_numbers<[1], [0], [0], [1], [0, 0, 1, 1], [], []>} : vector<80x40xf32>, vector<40x32xf32>, vector<80x32xf32> -> vector<80x32xf32>
    %c40_i32_40 = arith.constant 40 : i32
    %57 = tpu.dynamic_rotate %56 by %c40_i32_40 dim 0 : vector<80x32xf32>, i32 -> vector<80x32xf32>
    %cst_41 = arith.constant dense<0.000000e+00> : vector<80x64xf32>
    %58 = tpu.matmul %56, %2, %cst_41 {dimension_numbers = #tpu.dot_dimension_numbers<[1], [0], [0], [1], [0, 0, 1, 1], [], []>} : vector<80x32xf32>, vector<32x64xf32>, vector<80x64xf32> -> vector<80x64xf32>
    %cst_42 = arith.constant dense<0.000000e+00> : vector<80x64xf32>
    %59 = tpu.matmul %57, %3, %cst_42 {dimension_numbers = #tpu.dot_dimension_numbers<[1], [0], [0], [1], [0, 0, 1, 1], [], []>} : vector<80x32xf32>, vector<32x64xf32>, vector<80x64xf32> -> vector<80x64xf32>
    %60 = arith.addf %58, %59 : vector<80x64xf32>
    %61 = arith.addf %60, %32 : vector<80x64xf32>
    %cst_43 = arith.constant 0.000000e+00 : f32
    %62 = vector.broadcast %cst_43 : f32 to vector<80x64xf32>
    %63 = arith.maximumf %61, %62 : vector<80x64xf32>
    %cst_44 = arith.constant dense<0.000000e+00> : vector<80x64xf32>
    %64 = tpu.matmul %63, %5, %cst_44 {dimension_numbers = #tpu.dot_dimension_numbers<[1], [0], [0], [1], [0, 0, 1, 1], [], []>} : vector<80x64xf32>, vector<64x64xf32>, vector<80x64xf32> -> vector<80x64xf32>
    %65 = vector.broadcast %14 : vector<1x64xf32> to vector<80x64xf32>
    %66 = arith.addf %64, %65 : vector<80x64xf32>
    %cst_45 = arith.constant dense<0.000000e+00> : vector<40x64xf32>
    %67 = tpu.matmul %28, %66, %cst_45 {dimension_numbers = #tpu.dot_dimension_numbers<[1], [0], [0], [1], [0, 0, 1, 1], [], []>} : vector<40x80xf32>, vector<80x64xf32>, vector<40x64xf32> -> vector<40x64xf32>
    %cst_46 = arith.constant dense<0.000000e+00> : vector<40x64xf32>
    %68 = tpu.matmul %67, %6, %cst_46 {dimension_numbers = #tpu.dot_dimension_numbers<[1], [0], [0], [1], [0, 0, 1, 1], [], []>} : vector<40x64xf32>, vector<64x64xf32>, vector<40x64xf32> -> vector<40x64xf32>
    %cst_47 = arith.constant dense<0.000000e+00> : vector<40x64xf32>
    %69 = tpu.matmul %55, %7, %cst_47 {dimension_numbers = #tpu.dot_dimension_numbers<[1], [0], [0], [1], [0, 0, 1, 1], [], []>} : vector<40x32xf32>, vector<32x64xf32>, vector<40x64xf32> -> vector<40x64xf32>
    %70 = arith.addf %68, %69 : vector<40x64xf32>
    %71 = vector.broadcast %15 : vector<1x64xf32> to vector<40x64xf32>
    %72 = arith.addf %70, %71 : vector<40x64xf32>
    %cst_48 = arith.constant 0.000000e+00 : f32
    %73 = vector.broadcast %cst_48 : f32 to vector<40x64xf32>
    %74 = arith.maximumf %72, %73 : vector<40x64xf32>
    %cst_49 = arith.constant dense<0.000000e+00> : vector<40x32xf32>
    %75 = tpu.matmul %74, %8, %cst_49 {dimension_numbers = #tpu.dot_dimension_numbers<[1], [0], [0], [1], [0, 0, 1, 1], [], []>} : vector<40x64xf32>, vector<64x32xf32>, vector<40x32xf32> -> vector<40x32xf32>
    %76 = vector.broadcast %16 : vector<1x32xf32> to vector<40x32xf32>
    %77 = arith.addf %75, %76 : vector<40x32xf32>
    %78 = arith.addf %55, %77 : vector<40x32xf32>
    %cst_50 = arith.constant dense<0.000000e+00> : vector<80x32xf32>
    %79 = tpu.matmul %27, %78, %cst_50 {dimension_numbers = #tpu.dot_dimension_numbers<[1], [0], [0], [1], [0, 0, 1, 1], [], []>} : vector<80x40xf32>, vector<40x32xf32>, vector<80x32xf32> -> vector<80x32xf32>
    %c40_i32_51 = arith.constant 40 : i32
    %80 = tpu.dynamic_rotate %79 by %c40_i32_51 dim 0 : vector<80x32xf32>, i32 -> vector<80x32xf32>
    %cst_52 = arith.constant dense<0.000000e+00> : vector<80x64xf32>
    %81 = tpu.matmul %79, %2, %cst_52 {dimension_numbers = #tpu.dot_dimension_numbers<[1], [0], [0], [1], [0, 0, 1, 1], [], []>} : vector<80x32xf32>, vector<32x64xf32>, vector<80x64xf32> -> vector<80x64xf32>
    %cst_53 = arith.constant dense<0.000000e+00> : vector<80x64xf32>
    %82 = tpu.matmul %80, %3, %cst_53 {dimension_numbers = #tpu.dot_dimension_numbers<[1], [0], [0], [1], [0, 0, 1, 1], [], []>} : vector<80x32xf32>, vector<32x64xf32>, vector<80x64xf32> -> vector<80x64xf32>
    %83 = arith.addf %81, %82 : vector<80x64xf32>
    %84 = arith.addf %83, %32 : vector<80x64xf32>
    %cst_54 = arith.constant 0.000000e+00 : f32
    %85 = vector.broadcast %cst_54 : f32 to vector<80x64xf32>
    %86 = arith.maximumf %84, %85 : vector<80x64xf32>
    %cst_55 = arith.constant dense<0.000000e+00> : vector<80x64xf32>
    %87 = tpu.matmul %86, %5, %cst_55 {dimension_numbers = #tpu.dot_dimension_numbers<[1], [0], [0], [1], [0, 0, 1, 1], [], []>} : vector<80x64xf32>, vector<64x64xf32>, vector<80x64xf32> -> vector<80x64xf32>
    %88 = vector.broadcast %14 : vector<1x64xf32> to vector<80x64xf32>
    %89 = arith.addf %87, %88 : vector<80x64xf32>
    %cst_56 = arith.constant dense<0.000000e+00> : vector<40x64xf32>
    %90 = tpu.matmul %28, %89, %cst_56 {dimension_numbers = #tpu.dot_dimension_numbers<[1], [0], [0], [1], [0, 0, 1, 1], [], []>} : vector<40x80xf32>, vector<80x64xf32>, vector<40x64xf32> -> vector<40x64xf32>
    %cst_57 = arith.constant dense<0.000000e+00> : vector<40x64xf32>
    %91 = tpu.matmul %90, %6, %cst_57 {dimension_numbers = #tpu.dot_dimension_numbers<[1], [0], [0], [1], [0, 0, 1, 1], [], []>} : vector<40x64xf32>, vector<64x64xf32>, vector<40x64xf32> -> vector<40x64xf32>
    %cst_58 = arith.constant dense<0.000000e+00> : vector<40x64xf32>
    %92 = tpu.matmul %78, %7, %cst_58 {dimension_numbers = #tpu.dot_dimension_numbers<[1], [0], [0], [1], [0, 0, 1, 1], [], []>} : vector<40x32xf32>, vector<32x64xf32>, vector<40x64xf32> -> vector<40x64xf32>
    %93 = arith.addf %91, %92 : vector<40x64xf32>
    %94 = vector.broadcast %15 : vector<1x64xf32> to vector<40x64xf32>
    %95 = arith.addf %93, %94 : vector<40x64xf32>
    %cst_59 = arith.constant 0.000000e+00 : f32
    %96 = vector.broadcast %cst_59 : f32 to vector<40x64xf32>
    %97 = arith.maximumf %95, %96 : vector<40x64xf32>
    %cst_60 = arith.constant dense<0.000000e+00> : vector<40x32xf32>
    %98 = tpu.matmul %97, %8, %cst_60 {dimension_numbers = #tpu.dot_dimension_numbers<[1], [0], [0], [1], [0, 0, 1, 1], [], []>} : vector<40x64xf32>, vector<64x32xf32>, vector<40x32xf32> -> vector<40x32xf32>
    %99 = vector.broadcast %16 : vector<1x32xf32> to vector<40x32xf32>
    %100 = arith.addf %98, %99 : vector<40x32xf32>
    %101 = arith.addf %78, %100 : vector<40x32xf32>
    %cst_61 = arith.constant dense<0.000000e+00> : vector<40x48xf32>
    %102 = tpu.matmul %101, %9, %cst_61 {dimension_numbers = #tpu.dot_dimension_numbers<[1], [0], [0], [1], [0, 0, 1, 1], [], []>} : vector<40x32xf32>, vector<32x48xf32>, vector<40x48xf32> -> vector<40x48xf32>
    %103 = vector.broadcast %17 : vector<1x48xf32> to vector<40x48xf32>
    %104 = arith.addf %102, %103 : vector<40x48xf32>
    %cst_62 = arith.constant dense<0.000000e+00> : vector<40x48xf32>
    %105 = tpu.matmul %101, %10, %cst_62 {dimension_numbers = #tpu.dot_dimension_numbers<[1], [0], [0], [1], [0, 0, 1, 1], [], []>} : vector<40x32xf32>, vector<32x48xf32>, vector<40x48xf32> -> vector<40x48xf32>
    %106 = vector.broadcast %18 : vector<1x48xf32> to vector<40x48xf32>
    %107 = arith.addf %105, %106 : vector<40x48xf32>
    %cst_63 = arith.constant 0.000000e+00 : f32
    %108 = vector.broadcast %cst_63 : f32 to vector<40x48xf32>
    %109 = arith.subf %108, %104 : vector<40x48xf32>
    %110 = math.exp %109 : vector<40x48xf32>
    %cst_64 = arith.constant 1.000000e+00 : f32
    %111 = vector.broadcast %cst_64 : f32 to vector<40x48xf32>
    %112 = arith.addf %111, %110 : vector<40x48xf32>
    %113 = tpu.reciprocal %112 {approx = true} : vector<40x48xf32> -> vector<40x48xf32>
    %114 = arith.mulf %107, %113 : vector<40x48xf32>
    %c0_65 = arith.constant 0 : index
    %c0_66 = arith.constant 0 : index
    %115 = vector.load %arg3[%c0_65, %c0_66] : memref<64x40xf32, #tpu.memory_space<vmem>>, vector<64x40xf32>
    %cst_67 = arith.constant dense<0.000000e+00> : vector<64x48xf32>
    %116 = tpu.matmul %115, %114, %cst_67 {dimension_numbers = #tpu.dot_dimension_numbers<[1], [0], [0], [1], [0, 0, 1, 1], [], []>} : vector<64x40xf32>, vector<40x48xf32>, vector<64x48xf32> -> vector<64x48xf32>
    %117 = vector.extract_strided_slice %116 {offsets = [0, 0], sizes = [32, 48], strides = [1, 1]} : vector<64x48xf32> to vector<32x48xf32>
    %118 = vector.extract_strided_slice %116 {offsets = [32, 0], sizes = [32, 48], strides = [1, 1]} : vector<64x48xf32> to vector<32x48xf32>
    %cst_68 = arith.constant dense<0.000000e+00> : vector<32x32xf32>
    %119 = tpu.matmul %117, %118, %cst_68 {dimension_numbers = #tpu.dot_dimension_numbers<[1], [1], [0], [0], [0, 0, 1, 0], [], []>} : vector<32x48xf32>, vector<32x48xf32>, vector<32x32xf32> -> vector<32x32xf32>
    %c0_69 = arith.constant 0 : index
    %c0_70 = arith.constant 0 : index
    %120 = vector.load %arg4[%c0_69, %c0_70] : memref<32x32xf32, #tpu.memory_space<vmem>>, vector<32x32xf32>
    %121 = arith.addf %119, %120 : vector<32x32xf32>
    %cst_71 = arith.constant dense<0xFF800000> : vector<32xf32>
    %122 = vector.multi_reduction <maximumf>, %121, %cst_71 [1] : vector<32x32xf32> to vector<32xf32>
    %123 = vector.shape_cast %122 : vector<32xf32> to vector<32x1xf32>
    %c0_72 = arith.constant 0 : index
    %c0_73 = arith.constant 0 : index
    %124 = vector.load %arg5[%c0_72, %c0_73] : memref<2x32xf32, #tpu.memory_space<vmem>>, vector<2x32xf32>
    %cst_74 = arith.constant dense<0.000000e+00> : vector<2x1xf32>
    %125 = tpu.matmul %124, %123, %cst_74 {dimension_numbers = #tpu.dot_dimension_numbers<[1], [0], [0], [1], [0, 0, 1, 1], [], []>} : vector<2x32xf32>, vector<32x1xf32>, vector<2x1xf32> -> vector<2x1xf32>
    %c0_75 = arith.constant 0 : index
    %c0_76 = arith.constant 0 : index
    %126 = vector.load %arg8[%c0_75, %c0_76] : memref<2x1xf32, #tpu.memory_space<vmem>>, vector<2x1xf32>
    tpu.vector_store %arg8[%c0_75, %c0_76], %125 {strides = array<i32>} : memref<2x1xf32, #tpu.memory_space<vmem>>, vector<2x1xf32>,
    return
  }
}

</mosaic_0001>

<bundles_post_ra>
// kernel: tpu_custom_call.1
= control target key start
LH: loop header
LB: loop body
LE: loop exit
PB: predicated region body
PF: predicated region fallthrough
CT: control target
= control target key end

     0   :  { %vm96_vm0 = vcmask 64512   ;;  %vm256_vm1 = vcmask 326656   ;;  %vm208_vm2 = vcmask 130048   ;;  %vm334_vm3 = vcmask 261120   ;;  %s3222_s6 = inlined_call_operand.vmem [shape: f32[384,64], index: 6, kind: input, shape index: {}]   ;;  %s3223_s0 = inlined_call_operand.vmem [shape: f32[80,8], index: 0, kind: input, shape index: {}]   ;;  %s3224_s7 = inlined_call_operand.vmem [shape: f32[8,64], index: 7, kind: input, shape index: {}]   ;;  %s3225_s1 = inlined_call_operand.vmem [shape: f32[80,40], index: 1, kind: input, shape index: {}]   ;;  %s3226_s2 = inlined_call_operand.vmem [shape: f32[40,80], index: 2, kind: input, shape index: {}]   ;;  %s3227_s3 = inlined_call_operand.vmem [shape: f32[64,40], index: 3, kind: input, shape index: {}]   ;;  %s3228_s4 = inlined_call_operand.vmem [shape: f32[32,32], index: 4, kind: input, shape index: {}]   ;;  %s3229_s5 = inlined_call_operand.vmem [shape: f32[2,32], index: 5, kind: input, shape index: {}]   ;;  %s3230_s8 = inlined_call_operand.vmem [shape: f32[2,1], index: 8, kind: output, shape index: {}]  }
   0x1   :  { %v29_v0 = vld [vmem:[%s3222_s6] sm:$0xff]  ;;  %v86_v2 = vld [vmem:[%s3223_s0 + $0x8] sm:$0xff]  ;;  %v87_v3 = vld [vmem:[%s3223_s0 + $0x10] sm:$0xff]  ;;  %vm480_vm4 = vcmask 523264   ;;  %vm558_vm5 = vcmask 654336   ;;  %vm1864_vm6 = vcmask 392192  }
   0x2   :  { %v85_v1 = vld [vmem:[%s3223_s0] sm:$0xff]  ;;  %127 = vmatpush.msra.mxu0 %v29_v0  ;;  %v88_v4 = vld [vmem:[%s3223_s0 + $0x18] sm:$0xff]  ;;  %v30_v6 = vld [vmem:[%s3222_s6 + $0x8] sm:$0xff]  ;;  %vm1954_vm7 = vcmask 1024  }
   0x3   :  { %1960 = vmatmul.msk.f32.vlgmr.msra.gmra.mxu0 %vm96_vm0, %v85_v1  ;;  %v89_v5 = vld [vmem:[%s3223_s0 + $0x20] sm:$0xff]  ;;  %175 = vmatpush.msra.mxu1 %v30_v6  ;;  %v90_v7 = vld [vmem:[%s3223_s0 + $0x28] sm:$0xff]  ;;  %v91_v8 = vld [vmem:[%s3223_s0 + $0x30] sm:$0xff] }
   0x4   :  { %2182 = vmatpush.msra.mxu3 %v30_v6  ;;  %1965 = vmatmul.msk.f32.vlgmr.msra.gmra.mxu1 %vm96_vm0, %v90_v7  ;;  %v92_v9 = vld [vmem:[%s3223_s0 + $0x38] sm:$0xff]  ;;  %v93_v10 = vld [vmem:[%s3223_s0 + $0x40] sm:$0xff]  ;;  %v94_v12 = vld [vmem:[%s3223_s0 + $0x48] sm:$0xff] }
   0x5   :  { %1966 = vmatmul.msk.f32.vlgmr.msra.gmra.mxu3 %vm96_vm0, %v91_v8  ;;  %v2183_v16 = vld [vmem:[%s3224_s7] ss:$0 sm:$0xff]  ;;  %v2341_v24 = vld [vmem:[%s3225_s1 + $0x8] sm:$0xff]  ;;  %v2348_v25 = vld [vmem:[%s3225_s1 + $0x10] sm:$0xff] }
   0x6   :  { %v2333_v23 = vld [vmem:[%s3225_s1] sm:$0xff]  ;;  %v2355_v26 = vld [vmem:[%s3225_s1 + $0x18] sm:$0xff]  ;;  %v2369_v28 = vld [vmem:[%s3225_s1 + $0x28] sm:$0xff] }
   0x7   :  { %v2362_v27 = vld [vmem:[%s3225_s1 + $0x20] sm:$0xff]  ;;  %v40_v29 = vld [vmem:[%s3222_s6 + $0x58] sm:$0xff]  ;;  %v39_v30 = vld [vmem:[%s3222_s6 + $0x50] sm:$0xff] }
   0x8   :  { %238 = vmatpush.msra.mxu2 %v40_v29  ;;  %v2382_v31 = vld [vmem:[%s3225_s1 + $0x30] sm:$0xff]  ;;  %v2389_v32 = vld [vmem:[%s3225_s1 + $0x38] sm:$0xff]  ;;  %v2184_v33 = vld [vmem:[%s3224_s7 + $0x1] ss:$0 sm:$0xff] }
   0x9   :  { %v2399_v36 = vld [vmem:[%s3222_s6 + $0x28] sm:$0xff]  ;;  %v2404_v37 = vld [vmem:[%s3225_s1 + $0x40] sm:$0xff]  ;;  %v2416_v39 = vld [vmem:[%s3222_s6 + $0x18] sm:$0xff] }
   0xa   :  { %239 = vmatpush.msra.mxu2 %v39_v30  ;;  %424 = vmatpush.msrb.mxu1 %v2399_v36  ;;  %v2411_v38 = vld [vmem:[%s3222_s6 + $0x20] sm:$0xff]  ;;  %v2425_v42 = vld [vmem:[%s3225_s1 + $0x48] sm:$0xff]  ;;  %v2436_v49 = vld [vmem:[%s3222_s6 + $0x10] sm:$0xff] }
   0xb   :  { %1961 = vmatmul.msk.f32.gmra.mxu0 %vm96_vm0, %v86_v2  ;;  %v2443_v51 = vld [vmem:[%s3222_s6 + $0x48] sm:$0xff]  ;;  %v2448_v52 = vld [vmem:[%s3222_s6 + $0x40] sm:$0xff]  ;;  %v2454_v53 = vld [vmem:[%s3222_s6 + $0x38] sm:$0xff] }
   0xc   :  { %425 = vmatpush.msrb.mxu1 %v2411_v38  ;;  %377 = vmatpush.msrb.mxu0 %v2443_v51  ;;  %v2461_v54 = vld [vmem:[%s3222_s6 + $0x30] sm:$0xff]  ;;  %v2482_v0 = vld [vmem:[%s3222_s6 + $0xf8] sm:$0xff]  ;;  %v2493_v2 = vld [vmem:[%s3222_s6 + $0xe8] sm:$0xff] }
   0xd   :  { %1967 = vmatmul.msk.f32.gmra.mxu3 %vm96_vm0, %v92_v9  ;;  %v2487_v1 = vld [vmem:[%s3222_s6 + $0xf0] sm:$0xff]  ;;  %v2530_v6 = vld [vmem:[%s3222_s6 + $0x88] sm:$0xff]  ;;  %v2539_v7 = vld [vmem:[%s3222_s6 + $0x80] sm:$0xff] }
   0xe   :  { %426 = vmatpush.msrb.mxu1 %v2416_v39  ;;  %378 = vmatpush.msrb.mxu0 %v2448_v52  ;;  %v2546_v8 = vld [vmem:[%s3222_s6 + $0x78] sm:$0xff]  ;;  %v2552_v9 = vld [vmem:[%s3222_s6 + $0x70] sm:$0xff] }
  0x10   :  { %427 = vmatpush.msrb.mxu1 %v2436_v49  ;;  %379 = vmatpush.msrb.mxu0 %v2454_v53 }
  0x12   :  { %380 = vmatpush.msrb.mxu0 %v2461_v54 }
  0x13   :  { %1962 = vmatmul.msk.f32.gmra.mxu0 %vm96_vm0, %v87_v3  ;;  %v2499_v3 = vld [vmem:[%s3222_s6 + $0xe0] sm:$0xff] }
  0x14   :  { %633 = vmatpush.msra.mxu0 %v2482_v0 }
  0x15   :  { %1968 = vmatmul.msk.f32.gmra.mxu3 %vm96_vm0, %v93_v10  ;;  %v2560_v10 = vld [vmem:[%s3222_s6 + $0x68] sm:$0xff] }
  0x16   :  { %634 = vmatpush.msra.mxu0 %v2487_v1 }
  0x18   :  { %635 = vmatpush.msra.mxu0 %v2493_v2 }
  0x1a   :  { %636 = vmatpush.msra.mxu0 %v2499_v3 }
  0x1b   :  { %1963 = vmatmul.msk.f32.gmra.mxu0 %vm96_vm0, %v88_v4  ;;  %v2518_v4 = vld [vmem:[%s3222_s6 + $0x98] sm:$0xff] }
  0x1c   :  { %519 = vmatpush.msrb.mxu2 %v2518_v4 }
  0x1d   :  { %1969 = vmatmul.msk.f32.gmra.mxu3 %vm96_vm0, %v94_v12 }
  0x23   :  { %1964 = vmatmul.msk.f32.gmra.mxu0 %vm96_vm0, %v89_v5  ;;  %v2524_v5 = vld [vmem:[%s3222_s6 + $0x90] sm:$0xff] }
  0x24   :  { %520 = vmatpush.msrb.mxu2 %v2524_v5 }
  0x26   :  { %521 = vmatpush.msrb.mxu2 %v2530_v6 }
  0x28   :  { %522 = vmatpush.msrb.mxu2 %v2539_v7 }
  0x2a   :  { %523 = vmatpush.msrb.mxu2 %v2546_v8 }
  0x2c   :  { %524 = vmatpush.msrb.mxu2 %v2552_v9 }
  0x2e   :  { %525 = vmatpush.msrb.mxu2 %v2560_v10 }
  0x80   :  { %v129_v11 = vpop.f32.mrf.mxu0 }
  0x81   :  { %v2327_v22 = vadd.f32 %v2183_v16, %v129_v11  ;;  %v177_v34 = vpop.f32.mrf.mxu1  ;;  %v2566_v11 = vld [vmem:[%s3222_s6 + $0x60] sm:$0xff] }
  0x82   :  { %v178_v35 = vadd.f32 %v2184_v33, %v177_v34  ;;  %526 = vmatpush.msrb.mxu2 %v2566_v11 }
  0x84   :  { %1970 = vmatmul.msk.f32.vlgmr.msra.gmra.mxu2 %vm208_vm2, %v178_v35 }
  0x88   :  { %v132_v13 = vpop.f32.mrf.mxu0  ;;  %v180_v40 = vpop.f32.mrf.mxu3 }
  0x89   :  { %v2324_v21 = vadd.f32 %v2183_v16, %v132_v13  ;;  %v181_v41 = vadd.f32 %v2184_v33, %v180_v40 }
  0x8c   :  { %1971 = vmatmul.msk.f32.gmra.mxu2 %vm208_vm2, %v181_v41 }
  0x90   :  { %v135_v14 = vpop.f32.mrf.mxu0  ;;  %v183_v43 = vpop.f32.mrf.mxu3 }
  0x91   :  { %v2321_v20 = vadd.f32 %v2183_v16, %v135_v14  ;;  %v184_v44 = vadd.f32 %v2184_v33, %v183_v43 }
  0x94   :  { %1972 = vmatmul.msk.f32.gmra.mxu2 %vm208_vm2, %v184_v44 }
  0x98   :  { %v138_v15 = vpop.f32.mrf.mxu0  ;;  %v186_v45 = vpop.f32.mrf.mxu3 }
  0x99   :  { %v2318_v19 = vadd.f32 %v2183_v16, %v138_v15  ;;  %v187_v46 = vadd.f32 %v2184_v33, %v186_v45  ;;  %v2185_v15 = vld [vmem:[%s3224_s7 + $0x2] ss:$0 sm:$0xff] }
  0x9c   :  { %1973 = vmatmul.msk.f32.gmra.mxu2 %vm208_vm2, %v187_v46 }
  0xa0   :  { %v141_v17 = vpop.f32.mrf.mxu0  ;;  %v189_v47 = vpop.f32.mrf.mxu3 }
  0xa1   :  { %v2316_v18 = vadd.f32 %v2183_v16, %v141_v17  ;;  %v190_v48 = vadd.f32 %v2184_v33, %v189_v47 }
  0xa3   :  { %298 = vmatpush.msrb.mxu3 %v2316_v18 }
  0xa4   :  { %1974 = vmatmul.msk.f32.gmra.mxu2 %vm208_vm2, %v190_v48 }
  0xa5   :  { %299 = vmatpush.msrb.mxu3 %v2318_v19 }
  0xa7   :  { %300 = vmatpush.msrb.mxu3 %v2321_v20 }
  0xa9   :  { %301 = vmatpush.msrb.mxu3 %v2324_v21 }
  0xab   :  { %302 = vmatpush.msrb.mxu3 %v2327_v22 }
  0xac   :  { %1975 = vmatmul.msk.f32.vlgmr.msrb.gmra.mxu3 %vm256_vm1, %v2333_v23 }
  0xb4   :  { %1976 = vmatmul.msk.f32.gmra.mxu3 %vm256_vm1, %v2341_v24 }
  0xbc   :  { %1977 = vmatmul.msk.f32.gmra.mxu3 %vm256_vm1, %v2348_v25 }
  0xc4   :  { %1978 = vmatmul.msk.f32.gmra.mxu3 %vm256_vm1, %v2355_v26 }
  0xcc   :  { %1979 = vmatmul.msk.f32.gmra.mxu3 %vm256_vm1, %v2362_v27 }
  0xd4   :  { %1980 = vmatmul.msk.f32.gmra.mxu3 %vm256_vm1, %v2369_v28 }
  0xdc   :  { %1981 = vmatmul.msk.f32.gmra.mxu3 %vm256_vm1, %v2382_v31 }
  0xe4   :  { %1982 = vmatmul.msk.f32.gmra.mxu3 %vm256_vm1, %v2389_v32 }
  0xec   :  { %1983 = vmatmul.msk.f32.gmra.mxu3 %vm256_vm1, %v2404_v37 }
  0xf4   :  { %1984 = vmatmul.msk.f32.gmra.mxu3 %vm256_vm1, %v2425_v42 }
 0x107   :  { %v241_v13 = vpop.f32.mrf.mxu2 }
 0x108   :  { %v2576_v16 = vadd.f32 %v2185_v15, %v241_v13 }
 0x10f   :  { %v244_v17 = vpop.f32.mrf.mxu2 }
 0x110   :  { %v2580_v41 = vadd.f32 %v2185_v15, %v244_v17 }
 0x117   :  { %v247_v44 = vpop.f32.mrf.mxu2 }
 0x12f   :  { %v304_v50 = vpop.f32.mrf.mxu3 }
 0x130   :  { %1995 = vmatmul.msk.f32.vlgmr.msrb.gmra.mxu1 %vm334_vm3, %v304_v50 }
 0x137   :  { %v307_v55 = vpop.f32.mrf.mxu3 }
 0x138   :  { %1996 = vmatmul.msk.f32.gmra.mxu1 %vm334_vm3, %v307_v55 }
 0x13f   :  { %v310_v56 = vpop.f32.mrf.mxu3 }
 0x140   :  { %1997 = vmatmul.msk.f32.gmra.mxu1 %vm334_vm3, %v310_v56 }
 0x147   :  { %v313_v57 = vpop.f32.mrf.mxu3 }
 0x148   :  { %1998 = vmatmul.msk.f32.gmra.mxu1 %vm334_vm3, %v313_v57 }
 0x14f   :  { %v316_v58 = vpop.f32.mrf.mxu3 }
 0x150   :  { %1999 = vmatmul.msk.f32.gmra.mxu1 %vm334_vm3, %v316_v58 }
 0x157   :  { %v319_v59 = vpop.f32.mrf.mxu3 }
 0x158   :  { %1985 = vmatmul.msk.f32.vlgmr.msrb.gmra.mxu0 %vm334_vm3, %v319_v59  ;;  %2000 = vmatmul.msk.f32.gmra.mxu1 %vm334_vm3, %v319_v59 }
 0x159   :  { %853 = vmatpush.msrb.mxu0 %v2443_v51 }
 0x15b   :  { %854 = vmatpush.msrb.mxu0 %v2448_v52 }
 0x15d   :  { %855 = vmatpush.msrb.mxu0 %v2454_v53 }
 0x15f   :  { %v322_v60 = vpop.f32.mrf.mxu3  ;;  %856 = vmatpush.msrb.mxu0 %v2461_v54 }
 0x160   :  { %1986 = vmatmul.msk.f32.gmra.mxu0 %vm334_vm3, %v322_v60  ;;  %2001 = vmatmul.msk.f32.gmra.mxu1 %vm334_vm3, %v322_v60 }
 0x167   :  { %v325_v61 = vpop.f32.mrf.mxu3 }
 0x168   :  { %1987 = vmatmul.msk.f32.gmra.mxu0 %vm334_vm3, %v325_v61  ;;  %2002 = vmatmul.msk.f32.gmra.mxu1 %vm334_vm3, %v325_v61 }
 0x16f   :  { %v328_v62 = vpop.f32.mrf.mxu3 }
 0x170   :  { %1988 = vmatmul.msk.f32.gmra.mxu0 %vm334_vm3, %v328_v62  ;;  %2003 = vmatmul.msk.f32.gmra.mxu1 %vm334_vm3, %v328_v62 }
 0x177   :  { %v331_v63 = vpop.f32.mrf.mxu3 }
 0x178   :  { %1989 = vmatmul.msk.f32.gmra.mxu0 %vm334_vm3, %v331_v63  ;;  %2004 = vmatmul.msk.f32.gmra.mxu1 %vm334_vm3, %v331_v63 }
 0x180   :  { %1990 = vmatmul.msk.f32.gmra.mxu0 %vm334_vm3, %v304_v50  ;;  %v2584_v50 = vadd.f32 %v2185_v15, %v247_v44 }
 0x188   :  { %1991 = vmatmul.msk.f32.gmra.mxu0 %vm334_vm3, %v307_v55 }
 0x190   :  { %1992 = vmatmul.msk.f32.gmra.mxu0 %vm334_vm3, %v310_v56 }
 0x198   :  { %1993 = vmatmul.msk.f32.gmra.mxu0 %vm334_vm3, %v313_v57  ;;  %v250_v57 = vpop.f32.mrf.mxu2 }
 0x199   :  { %v2588_v61 = vadd.f32 %v2185_v15, %v250_v57 }
 0x1a0   :  { %1994 = vmatmul.msk.f32.gmra.mxu0 %vm334_vm3, %v316_v58  ;;  %v253_v13 = vpop.f32.mrf.mxu2 }
 0x1a8   :  { %2020 = vmatmul.msk.f32.vlgmr.msra.gmra.mxu0 %vm334_vm3, %v2327_v22 }
 0x1a9   :  { %1091 = vmatpush.msra.mxu0 %v2482_v0 }
 0x1ab   :  { %1092 = vmatpush.msra.mxu0 %v2487_v1 }
 0x1ad   :  { %1093 = vmatpush.msra.mxu0 %v2493_v2  ;;  %v429_v12 = vpop.f32.mrf.mxu1 }
 0x1af   :  { %1094 = vmatpush.msra.mxu0 %v2499_v3 }
 0x1b0   :  { %2021 = vmatmul.msk.f32.gmra.mxu0 %vm334_vm3, %v2324_v21 }
 0x1b5   :  { %v432_v14 = vpop.f32.mrf.mxu1 }
 0x1b8   :  { %2022 = vmatmul.msk.f32.gmra.mxu0 %vm334_vm3, %v2321_v20 }
 0x1bd   :  { %v435_v33 = vpop.f32.mrf.mxu1 }
 0x1c0   :  { %2023 = vmatmul.msk.f32.gmra.mxu0 %vm334_vm3, %v2318_v19 }
 0x1c5   :  { %v438_v46 = vpop.f32.mrf.mxu1 }
 0x1c8   :  { %2024 = vmatmul.msk.f32.gmra.mxu0 %vm334_vm3, %v2316_v18 }
 0x1cd   :  { %v441_v59 = vpop.f32.mrf.mxu1 }
 0x1d5   :  { %v382_v29 = vpop.f32.mrf.mxu0 }
 0x1d6   :  { %v430_v30 = vadd.f32 %v429_v12, %v382_v29  ;;  %v2592_v29 = vadd.f32 %v2185_v15, %v253_v13 }
 0x1d8   :  { %v459_v34 = vadd.f32 %v430_v30, %v2576_v16 }
 0x1da   :  { %v469_v35 = vmax.f32 %v459_v34, 0.0 }
 0x1dc   :  { %2005 = vmatmul.msk.f32.vlgmr.msrb.gmra.mxu2 %vm480_vm4, %v469_v35 }
 0x1dd   :  { %v385_v40 = vpop.f32.mrf.mxu0 }
 0x1de   :  { %v433_v43 = vadd.f32 %v432_v14, %v385_v40  ;;  %v444_v14 = vpop.f32.mrf.mxu1 }
 0x1e0   :  { %v460_v45 = vadd.f32 %v433_v43, %v2580_v41 }
 0x1e2   :  { %v470_v47 = vmax.f32 %v460_v45, 0.0 }
 0x1e4   :  { %2006 = vmatmul.msk.f32.gmra.mxu2 %vm480_vm4, %v470_v47 }
 0x1e5   :  { %v388_v48 = vpop.f32.mrf.mxu0 }
 0x1e6   :  { %v436_v55 = vadd.f32 %v435_v33, %v388_v48  ;;  %v447_v43 = vpop.f32.mrf.mxu1 }
 0x1e8   :  { %v461_v56 = vadd.f32 %v436_v55, %v2584_v50 }
 0x1ea   :  { %v471_v58 = vmax.f32 %v461_v56, 0.0 }
 0x1ec   :  { %2007 = vmatmul.msk.f32.gmra.mxu2 %vm480_vm4, %v471_v58 }
 0x1ed   :  { %v391_v60 = vpop.f32.mrf.mxu0 }
 0x1ee   :  { %v439_v62 = vadd.f32 %v438_v46, %v391_v60  ;;  %v450_v15 = vpop.f32.mrf.mxu1 }
 0x1f0   :  { %v462_v63 = vadd.f32 %v439_v62, %v2588_v61 }
 0x1f2   :  { %v472_v12 = vmax.f32 %v462_v63, 0.0 }
 0x1f4   :  { %2008 = vmatmul.msk.f32.gmra.mxu2 %vm480_vm4, %v472_v12 }
 0x1f5   :  { %v394_v17 = vpop.f32.mrf.mxu0 }
 0x1f6   :  { %v442_v30 = vadd.f32 %v441_v59, %v394_v17  ;;  %v453_v60 = vpop.f32.mrf.mxu1 }
 0x1f8   :  { %v463_v33 = vadd.f32 %v442_v30, %v2592_v29 }
 0x1fa   :  { %v473_v34 = vmax.f32 %v463_v33, 0.0 }
 0x1fc   :  { %2009 = vmatmul.msk.f32.gmra.mxu2 %vm480_vm4, %v473_v34 }
 0x1fd   :  { %v397_v35 = vpop.f32.mrf.mxu0 }
 0x1fe   :  { %v445_v40 = vadd.f32 %v444_v14, %v397_v35  ;;  %v456_v14 = vpop.f32.mrf.mxu1 }
 0x200   :  { %v464_v44 = vadd.f32 %v445_v40, %v2576_v16 }
 0x202   :  { %v474_v45 = vmax.f32 %v464_v44, 0.0 }
 0x204   :  { %2010 = vmatmul.msk.f32.gmra.mxu2 %vm480_vm4, %v474_v45 }
 0x205   :  { %v400_v46 = vpop.f32.mrf.mxu0 }
 0x206   :  { %v448_v47 = vadd.f32 %v447_v43, %v400_v46 }
 0x208   :  { %v465_v48 = vadd.f32 %v448_v47, %v2580_v41 }
 0x20a   :  { %v475_v55 = vmax.f32 %v465_v48, 0.0 }
 0x20c   :  { %2011 = vmatmul.msk.f32.gmra.mxu2 %vm480_vm4, %v475_v55  ;;  %v2609_v55 = vld [vmem:[%s3224_s7 + $0x3] ss:$0 sm:$0xff] }
 0x20d   :  { %v403_v56 = vpop.f32.mrf.mxu0 }
 0x20e   :  { %v451_v57 = vadd.f32 %v450_v15, %v403_v56 }
 0x210   :  { %v466_v58 = vadd.f32 %v451_v57, %v2584_v50 }
 0x212   :  { %v476_v59 = vmax.f32 %v466_v58, 0.0 }
 0x214   :  { %2012 = vmatmul.msk.f32.gmra.mxu2 %vm480_vm4, %v476_v59 }
 0x215   :  { %v406_v62 = vpop.f32.mrf.mxu0 }
 0x216   :  { %v454_v63 = vadd.f32 %v453_v60, %v406_v62 }
 0x218   :  { %v467_v12 = vadd.f32 %v454_v63, %v2588_v61 }
 0x21a   :  { %v477_v13 = vmax.f32 %v467_v12, 0.0 }
 0x21c   :  { %2013 = vmatmul.msk.f32.gmra.mxu2 %vm480_vm4, %v477_v13 }
 0x21d   :  { %v409_v17 = vpop.f32.mrf.mxu0 }
 0x21e   :  { %v457_v30 = vadd.f32 %v456_v14, %v409_v17 }
 0x220   :  { %v468_v33 = vadd.f32 %v457_v30, %v2592_v29  ;;  %v2624_v30 = vld [vmem:[%s3226_s2] sm:$0xff] }
 0x222   :  { %v478_v34 = vmax.f32 %v468_v33, 0.0  ;;  %v2631_v33 = vld [vmem:[%s3222_s6 + $0xd8] sm:$0xff] }
 0x223   :  { %3247 = vst [vmem:[#allocation2_spill] sm:$0xff] %v2631_v33  ;;  %676 = vmatpush.msra.mxu1 %v2631_v33 }
 0x224   :  { %2014 = vmatmul.msk.f32.gmra.mxu2 %vm480_vm4, %v478_v34  ;;  %v2636_v34 = vld [vmem:[%s3222_s6 + $0xd0] sm:$0xff] }
 0x225   :  { %3248 = vst [vmem:[#allocation3_spill] sm:$0xff] %v2636_v34  ;;  %677 = vmatpush.msra.mxu1 %v2636_v34 }
 0x25f   :  { %v528_v35 = vpop.f32.mrf.mxu2 }
 0x260   :  { %v529_v17 = vadd.f32 %v2609_v55, %v528_v35  ;;  %v2642_v35 = vld [vmem:[%s3222_s6 + $0xc8] sm:$0xff] }
 0x261   :  { %3249 = vst [vmem:[#allocation4_spill] sm:$0xff] %v2642_v35  ;;  %678 = vmatpush.msra.mxu1 %v2642_v35 }
 0x267   :  { %v531_v40 = vpop.f32.mrf.mxu2 }
 0x268   :  { %v532_v14 = vadd.f32 %v2609_v55, %v531_v40  ;;  %v2648_v40 = vld [vmem:[%s3222_s6 + $0xc0] sm:$0xff] }
 0x269   :  { %3250 = vst [vmem:[#allocation5_spill] sm:$0xff] %v2648_v40  ;;  %679 = vmatpush.msra.mxu1 %v2648_v40 }
 0x26f   :  { %v534_v43 = vpop.f32.mrf.mxu2 }
 0x270   :  { %v535_v13 = vadd.f32 %v2609_v55, %v534_v43  ;;  %v2653_v43 = vld [vmem:[%s3226_s2 + $0x8] sm:$0xff] }
 0x277   :  { %v537_v44 = vpop.f32.mrf.mxu2 }
 0x278   :  { %v538_v12 = vadd.f32 %v2609_v55, %v537_v44  ;;  %v2659_v44 = vld [vmem:[%s3222_s6 + $0xb8] sm:$0xff] }
 0x279   :  { %3251 = vst [vmem:[#allocation6_spill] sm:$0xff] %v2659_v44  ;;  %680 = vmatpush.msra.mxu1 %v2659_v44 }
 0x27f   :  { %v540_v45 = vpop.f32.mrf.mxu2 }
 0x280   :  { %v541_v63 = vadd.f32 %v2609_v55, %v540_v45  ;;  %v2667_v45 = vld [vmem:[%s3222_s6 + $0xb0] sm:$0xff] }
 0x281   :  { %3252 = vst [vmem:[#allocation7_spill] sm:$0xff] %v2667_v45  ;;  %681 = vmatpush.msra.mxu1 %v2667_v45 }
 0x287   :  { %v543_v46 = vpop.f32.mrf.mxu2 }
 0x288   :  { %v544_v62 = vadd.f32 %v2609_v55, %v543_v46  ;;  %v2673_v46 = vld [vmem:[%s3222_s6 + $0xa8] sm:$0xff] }
 0x289   :  { %3253 = vst [vmem:[#allocation8_spill] sm:$0xff] %v2673_v46  ;;  %682 = vmatpush.msra.mxu1 %v2673_v46 }
 0x28f   :  { %v546_v47 = vpop.f32.mrf.mxu2 }
 0x290   :  { %v547_v60 = vadd.f32 %v2609_v55, %v546_v47  ;;  %v2679_v47 = vld [vmem:[%s3226_s2 + $0x10] sm:$0xff] }
 0x297   :  { %v549_v48 = vpop.f32.mrf.mxu2 }
 0x298   :  { %v550_v59 = vadd.f32 %v2609_v55, %v549_v48  ;;  %v2687_v48 = vld [vmem:[%s3226_s2 + $0x18] sm:$0xff] }
 0x299   :  { %3254 = vst [vmem:[#allocation9_spill] sm:$0xff] %v2687_v48 }
 0x29f   :  { %v552_v15 = vpop.f32.mrf.mxu2 }
 0x2a0   :  { %v553_v58 = vadd.f32 %v2609_v55, %v552_v15  ;;  %v2694_v15 = vld [vmem:[%s3226_s2 + $0x20] sm:$0xff] }
 0x2a1   :  { %3255 = vst [vmem:[#allocation10_spill] sm:$0xff] %v2694_v15 }
 0x2a7   :  { %v555_v56 = vpop.f32.mrf.mxu2 }
 0x2a8   :  { %v556_v57 = vadd.f32 %v2609_v55, %v555_v56  ;;  %v2701_v56 = vld [vmem:[%s3222_s6 + $0xa0] sm:$0xff] }
 0x2a9   :  { %3256 = vst [vmem:[#allocation11_spill] sm:$0xff] %v2701_v56  ;;  %683 = vmatpush.msra.mxu1 %v2701_v56 }
 0x2aa   :  { %580 = vmatpush.msra.mxu3 %v556_v57 }
 0x2ab   :  { %900 = vmatpush.msrb.mxu1 %v2399_v36 }
 0x2ac   :  { %581 = vmatpush.msra.mxu3 %v553_v58  ;;  %v2712_v58 = vld [vmem:[%s3222_s6 + $0x138] sm:$0xff] }
 0x2ad   :  { %901 = vmatpush.msrb.mxu1 %v2411_v38  ;;  %735 = vmatpush.msra.mxu2 %v2712_v58 }
 0x2ae   :  { %582 = vmatpush.msra.mxu3 %v550_v59  ;;  %v2717_v59 = vld [vmem:[%s3222_s6 + $0x130] sm:$0xff] }
 0x2af   :  { %902 = vmatpush.msrb.mxu1 %v2416_v39  ;;  %736 = vmatpush.msra.mxu2 %v2717_v59 }
 0x2b0   :  { %583 = vmatpush.msra.mxu3 %v547_v60  ;;  %v2724_v60 = vld [vmem:[%s3222_s6 + $0x128] sm:$0xff] }
 0x2b1   :  { %903 = vmatpush.msrb.mxu1 %v2436_v49  ;;  %737 = vmatpush.msra.mxu2 %v2724_v60 }
 0x2b2   :  { %584 = vmatpush.msra.mxu3 %v544_v62  ;;  %v2731_v62 = vld [vmem:[%s3222_s6 + $0x120] sm:$0xff] }
 0x2b3   :  { %738 = vmatpush.msra.mxu2 %v2731_v62 }
 0x2b4   :  { %585 = vmatpush.msra.mxu3 %v541_v63 }
 0x2b6   :  { %586 = vmatpush.msra.mxu3 %v538_v12 }
 0x2b8   :  { %587 = vmatpush.msra.mxu3 %v535_v13 }
 0x2ba   :  { %588 = vmatpush.msra.mxu3 %v532_v14 }
 0x2bc   :  { %589 = vmatpush.msra.mxu3 %v529_v17  ;;  %v2748_v17 = vld [vmem:[%s3222_s6 + $0x118] sm:$0xff] }
 0x2bd   :  { %2015 = vmatmul.msk.f32.vlgmr.msra.gmra.mxu3 %vm558_vm5, %v2624_v30  ;;  %3257 = vst [vmem:[#allocation12_spill] sm:$0xff] %v2748_v17  ;;  %739 = vmatpush.msra.mxu2 %v2748_v17 }
 0x2c5   :  { %2016 = vmatmul.msk.f32.gmra.mxu3 %vm558_vm5, %v2653_v43 }
 0x2cd   :  { %2017 = vmatmul.msk.f32.gmra.mxu3 %vm558_vm5, %v2679_v47 }
 0x2d5   :  { %2018 = vmatmul.msk.f32.gmra.mxu3 %vm558_vm5, %v2687_v48 }
 0x2dd   :  { %2019 = vmatmul.msk.f32.gmra.mxu3 %vm558_vm5, %v2694_v15 }
 0x340   :  { %v591_v57 = vpop.f32.mrf.mxu3 }
 0x341   :  { %2025 = vmatmul.msk.f32.vlgmr.msra.gmra.mxu1 %vm480_vm4, %v591_v57  ;;  %v2754_v57 = vld [vmem:[%s3222_s6 + $0x110] sm:$0xff] }
 0x342   :  { %1134 = vmatpush.msra.mxu1 %v2631_v33  ;;  %3258 = vst [vmem:[#allocation13_spill] sm:$0xff] %v2754_v57  ;;  %740 = vmatpush.msra.mxu2 %v2754_v57 }
 0x344   :  { %1135 = vmatpush.msra.mxu1 %v2636_v34 }
 0x346   :  { %1136 = vmatpush.msra.mxu1 %v2642_v35 }
 0x348   :  { %v594_v63 = vpop.f32.mrf.mxu3  ;;  %1137 = vmatpush.msra.mxu1 %v2648_v40 }
 0x349   :  { %2026 = vmatmul.msk.f32.gmra.mxu1 %vm480_vm4, %v594_v63  ;;  %v2760_v63 = vld [vmem:[%s3222_s6 + $0x108] sm:$0xff] }
 0x34a   :  { %1138 = vmatpush.msra.mxu1 %v2659_v44  ;;  %3259 = vst [vmem:[#allocation14_spill] sm:$0xff] %v2760_v63  ;;  %741 = vmatpush.msra.mxu2 %v2760_v63 }
 0x34c   :  { %1139 = vmatpush.msra.mxu1 %v2667_v45 }
 0x34e   :  { %1140 = vmatpush.msra.mxu1 %v2673_v46 }
 0x350   :  { %v597_v12 = vpop.f32.mrf.mxu3  ;;  %1141 = vmatpush.msra.mxu1 %v2701_v56 }
 0x351   :  { %2027 = vmatmul.msk.f32.gmra.mxu1 %vm480_vm4, %v597_v12  ;;  %v2766_v12 = vld [vmem:[%s3222_s6 + $0x100] sm:$0xff] }
 0x352   :  { %3260 = vst [vmem:[#allocation15_spill] sm:$0xff] %v2766_v12  ;;  %742 = vmatpush.msra.mxu2 %v2766_v12 }
 0x354   :  { %993 = vmatpush.msrb.mxu2 %v2518_v4 }
 0x356   :  { %994 = vmatpush.msrb.mxu2 %v2524_v5 }
 0x358   :  { %v600_v13 = vpop.f32.mrf.mxu3  ;;  %995 = vmatpush.msrb.mxu2 %v2530_v6 }
 0x359   :  { %2028 = vmatmul.msk.f32.gmra.mxu1 %vm480_vm4, %v600_v13  ;;  %v638_v13 = vpop.f32.mrf.mxu0 }
 0x35a   :  { %996 = vmatpush.msrb.mxu2 %v2539_v7 }
 0x35c   :  { %997 = vmatpush.msrb.mxu2 %v2546_v8 }
 0x35e   :  { %998 = vmatpush.msrb.mxu2 %v2552_v9 }
 0x360   :  { %v603_v14 = vpop.f32.mrf.mxu3  ;;  %999 = vmatpush.msrb.mxu2 %v2560_v10 }
 0x361   :  { %2029 = vmatmul.msk.f32.gmra.mxu1 %vm480_vm4, %v603_v14  ;;  %v2780_v14 = vld [vmem:[%s3224_s7 + $0x4] ss:$0 sm:$0xff]  ;;  %v641_v45 = vpop.f32.mrf.mxu0 }
 0x362   :  { %1000 = vmatpush.msrb.mxu2 %v2566_v11 }
 0x369   :  { %v644_v15 = vpop.f32.mrf.mxu0 }
 0x3be   :  { %v685_v56 = vpop.f32.mrf.mxu1 }
 0x3bf   :  { %v686_v46 = vadd.f32 %v685_v56, %v638_v13 }
 0x3c1   :  { %v701_v44 = vadd.f32 %v2780_v14, %v686_v46 }
 0x3c3   :  { %v706_v40 = vmax.f32 %v701_v44, 0.0 }
 0x3c5   :  { %2030 = vmatmul.msk.f32.vlgmr.msra.gmra.mxu2 %vm480_vm4, %v706_v40 }
 0x3c6   :  { %v688_v35 = vpop.f32.mrf.mxu1  ;;  %1191 = vmatpush.msra.mxu2 %v2712_v58 }
 0x3c7   :  { %v689_v34 = vadd.f32 %v688_v35, %v641_v45 }
 0x3c8   :  { %1192 = vmatpush.msra.mxu2 %v2717_v59 }
 0x3c9   :  { %v702_v33 = vadd.f32 %v2780_v14, %v689_v34  ;;  %v647_v34 = vpop.f32.mrf.mxu0 }
 0x3ca   :  { %1193 = vmatpush.msra.mxu2 %v2724_v60 }
 0x3cb   :  { %v707_v48 = vmax.f32 %v702_v33, 0.0 }
 0x3cc   :  { %1194 = vmatpush.msra.mxu2 %v2731_v62 }
 0x3cd   :  { %2031 = vmatmul.msk.f32.gmra.mxu2 %vm480_vm4, %v707_v48 }
 0x3ce   :  { %v691_v46 = vpop.f32.mrf.mxu1  ;;  %1195 = vmatpush.msra.mxu2 %v2748_v17 }
 0x3cf   :  { %v692_v40 = vadd.f32 %v691_v46, %v644_v15 }
 0x3d0   :  { %1196 = vmatpush.msra.mxu2 %v2754_v57 }
 0x3d1   :  { %v703_v35 = vadd.f32 %v2780_v14, %v692_v40  ;;  %v650_v15 = vpop.f32.mrf.mxu0 }
 0x3d2   :  { %1197 = vmatpush.msra.mxu2 %v2760_v63 }
 0x3d3   :  { %v708_v44 = vmax.f32 %v703_v35, 0.0 }
 0x3d4   :  { %1198 = vmatpush.msra.mxu2 %v2766_v12 }
 0x3d5   :  { %2032 = vmatmul.msk.f32.gmra.mxu2 %vm480_vm4, %v708_v44  ;;  %v2803_v44 = vld [vmem:[%s3224_s7 + $0x5] ss:$0 sm:$0xff] }
 0x3d6   :  { %v694_v33 = vpop.f32.mrf.mxu1 }
 0x3d7   :  { %v695_v45 = vadd.f32 %v694_v33, %v647_v34 }
 0x3d9   :  { %v704_v48 = vadd.f32 %v2780_v14, %v695_v45 }
 0x3db   :  { %v709_v56 = vmax.f32 %v704_v48, 0.0 }
 0x3dd   :  { %2033 = vmatmul.msk.f32.gmra.mxu2 %vm480_vm4, %v709_v56 }
 0x3de   :  { %v697_v13 = vpop.f32.mrf.mxu1 }
 0x3df   :  { %v698_v46 = vadd.f32 %v697_v13, %v650_v15 }
 0x3e1   :  { %v705_v40 = vadd.f32 %v2780_v14, %v698_v46 }
 0x3e3   :  { %v710_v57 = vmax.f32 %v705_v40, 0.0 }
 0x3e5   :  { %2034 = vmatmul.msk.f32.gmra.mxu2 %vm480_vm4, %v710_v57 }
 0x448   :  { %v744_v35 = vpop.f32.mrf.mxu2 }
 0x449   :  { %v745_v13 = vadd.f32 %v2803_v44, %v744_v35 }
 0x450   :  { %v747_v63 = vpop.f32.mrf.mxu2 }
 0x451   :  { %v748_v57 = vadd.f32 %v2803_v44, %v747_v63 }
 0x458   :  { %v750_v12 = vpop.f32.mrf.mxu2 }
 0x459   :  { %v751_v48 = vadd.f32 %v2803_v44, %v750_v12 }
 0x45b   :  { %v2818_v46 = vadd.f32 %v751_v48, %v2321_v20 }
 0x460   :  { %v753_v17 = vpop.f32.mrf.mxu2 }
 0x461   :  { %v754_v33 = vadd.f32 %v2803_v44, %v753_v17  ;;  %v2822_v17 = vadd.f32 %v748_v57, %v2324_v21 }
 0x463   :  { %v2813_v15 = vadd.f32 %v754_v33, %v2318_v19 }
 0x468   :  { %v756_v34 = vpop.f32.mrf.mxu2 }
 0x469   :  { %v757_v45 = vadd.f32 %v2803_v44, %v756_v34 }
 0x46b   :  { %v2809_v56 = vadd.f32 %v757_v45, %v2316_v18  ;;  %v2826_v18 = vadd.f32 %v745_v13, %v2327_v22 }
 0x46d   :  { %775 = vmatpush.msrb.mxu3 %v2809_v56 }
 0x46f   :  { %776 = vmatpush.msrb.mxu3 %v2813_v15 }
 0x471   :  { %777 = vmatpush.msrb.mxu3 %v2818_v46 }
 0x473   :  { %778 = vmatpush.msrb.mxu3 %v2822_v17 }
 0x475   :  { %779 = vmatpush.msrb.mxu3 %v2826_v18 }
 0x476   :  { %2035 = vmatmul.msk.f32.vlgmr.msrb.gmra.mxu3 %vm256_vm1, %v2333_v23 }
 0x47e   :  { %2036 = vmatmul.msk.f32.gmra.mxu3 %vm256_vm1, %v2341_v24 }
 0x486   :  { %2037 = vmatmul.msk.f32.gmra.mxu3 %vm256_vm1, %v2348_v25 }
 0x48e   :  { %2038 = vmatmul.msk.f32.gmra.mxu3 %vm256_vm1, %v2355_v26 }
 0x496   :  { %2039 = vmatmul.msk.f32.gmra.mxu3 %vm256_vm1, %v2362_v27 }
 0x49e   :  { %2040 = vmatmul.msk.f32.gmra.mxu3 %vm256_vm1, %v2369_v28 }
 0x4a6   :  { %2041 = vmatmul.msk.f32.gmra.mxu3 %vm256_vm1, %v2382_v31 }
 0x4ae   :  { %2042 = vmatmul.msk.f32.gmra.mxu3 %vm256_vm1, %v2389_v32 }
 0x4b6   :  { %2043 = vmatmul.msk.f32.gmra.mxu3 %vm256_vm1, %v2404_v37 }
 0x4be   :  { %2044 = vmatmul.msk.f32.gmra.mxu3 %vm256_vm1, %v2425_v42 }
 0x4f9   :  { %v781_v19 = vpop.f32.mrf.mxu3 }
 0x4fa   :  { %2055 = vmatmul.msk.f32.vlgmr.msrb.gmra.mxu1 %vm334_vm3, %v781_v19 }
 0x4fb   :  { %1356 = vmatpush.msrb.mxu1 %v2399_v36 }
 0x4fd   :  { %1357 = vmatpush.msrb.mxu1 %v2411_v38 }
 0x4ff   :  { %1358 = vmatpush.msrb.mxu1 %v2416_v39 }
 0x501   :  { %v784_v20 = vpop.f32.mrf.mxu3  ;;  %1359 = vmatpush.msrb.mxu1 %v2436_v49 }
 0x502   :  { %2056 = vmatmul.msk.f32.gmra.mxu1 %vm334_vm3, %v784_v20 }
 0x509   :  { %v787_v21 = vpop.f32.mrf.mxu3 }
 0x50a   :  { %2057 = vmatmul.msk.f32.gmra.mxu1 %vm334_vm3, %v787_v21 }
 0x511   :  { %v790_v22 = vpop.f32.mrf.mxu3 }
 0x512   :  { %2058 = vmatmul.msk.f32.gmra.mxu1 %vm334_vm3, %v790_v22 }
 0x519   :  { %v793_v23 = vpop.f32.mrf.mxu3 }
 0x51a   :  { %2059 = vmatmul.msk.f32.gmra.mxu1 %vm334_vm3, %v793_v23 }
 0x521   :  { %v796_v24 = vpop.f32.mrf.mxu3 }
 0x522   :  { %2045 = vmatmul.msk.f32.vlgmr.msrb.gmra.mxu0 %vm334_vm3, %v796_v24  ;;  %2060 = vmatmul.msk.f32.gmra.mxu1 %vm334_vm3, %v796_v24 }
 0x523   :  { %1309 = vmatpush.msrb.mxu0 %v2443_v51 }
 0x525   :  { %1310 = vmatpush.msrb.mxu0 %v2448_v52 }
 0x527   :  { %1311 = vmatpush.msrb.mxu0 %v2454_v53 }
 0x529   :  { %v799_v25 = vpop.f32.mrf.mxu3  ;;  %1312 = vmatpush.msrb.mxu0 %v2461_v54 }
 0x52a   :  { %2046 = vmatmul.msk.f32.gmra.mxu0 %vm334_vm3, %v799_v25  ;;  %2061 = vmatmul.msk.f32.gmra.mxu1 %vm334_vm3, %v799_v25 }
 0x531   :  { %v802_v26 = vpop.f32.mrf.mxu3 }
 0x532   :  { %2047 = vmatmul.msk.f32.gmra.mxu0 %vm334_vm3, %v802_v26  ;;  %2062 = vmatmul.msk.f32.gmra.mxu1 %vm334_vm3, %v802_v26 }
 0x539   :  { %v805_v27 = vpop.f32.mrf.mxu3 }
 0x53a   :  { %2048 = vmatmul.msk.f32.gmra.mxu0 %vm334_vm3, %v805_v27  ;;  %2063 = vmatmul.msk.f32.gmra.mxu1 %vm334_vm3, %v805_v27 }
 0x541   :  { %v808_v28 = vpop.f32.mrf.mxu3 }
 0x542   :  { %2049 = vmatmul.msk.f32.gmra.mxu0 %vm334_vm3, %v808_v28  ;;  %2064 = vmatmul.msk.f32.gmra.mxu1 %vm334_vm3, %v808_v28 }
 0x54a   :  { %2050 = vmatmul.msk.f32.gmra.mxu0 %vm334_vm3, %v781_v19 }
 0x552   :  { %2051 = vmatmul.msk.f32.gmra.mxu0 %vm334_vm3, %v784_v20 }
 0x55a   :  { %2052 = vmatmul.msk.f32.gmra.mxu0 %vm334_vm3, %v787_v21 }
 0x562   :  { %2053 = vmatmul.msk.f32.gmra.mxu0 %vm334_vm3, %v790_v22 }
 0x56a   :  { %2054 = vmatmul.msk.f32.gmra.mxu0 %vm334_vm3, %v793_v23 }
 0x572   :  { %2080 = vmatmul.msk.f32.vlgmr.msra.gmra.mxu0 %vm334_vm3, %v2826_v18 }
 0x573   :  { %1547 = vmatpush.msra.mxu0 %v2482_v0 }
 0x575   :  { %1548 = vmatpush.msra.mxu0 %v2487_v1 }
 0x577   :  { %1549 = vmatpush.msra.mxu0 %v2493_v2  ;;  %v905_v31 = vpop.f32.mrf.mxu1 }
 0x579   :  { %1550 = vmatpush.msra.mxu0 %v2499_v3 }
 0x57a   :  { %2081 = vmatmul.msk.f32.gmra.mxu0 %vm334_vm3, %v2822_v17 }
 0x57f   :  { %v908_v32 = vpop.f32.mrf.mxu1 }
 0x582   :  { %2082 = vmatmul.msk.f32.gmra.mxu0 %vm334_vm3, %v2818_v46 }
 0x587   :  { %v911_v38 = vpop.f32.mrf.mxu1 }
 0x58a   :  { %2083 = vmatmul.msk.f32.gmra.mxu0 %vm334_vm3, %v2813_v15 }
 0x58f   :  { %v914_v53 = vpop.f32.mrf.mxu1 }
 0x592   :  { %2084 = vmatmul.msk.f32.gmra.mxu0 %vm334_vm3, %v2809_v56 }
 0x59f   :  { %v858_v36 = vpop.f32.mrf.mxu0 }
 0x5a0   :  { %v906_v37 = vadd.f32 %v905_v31, %v858_v36 }
 0x5a2   :  { %v935_v39 = vadd.f32 %v906_v37, %v2576_v16 }
 0x5a4   :  { %v945_v42 = vmax.f32 %v935_v39, 0.0 }
 0x5a6   :  { %2065 = vmatmul.msk.f32.vlgmr.msrb.gmra.mxu2 %vm480_vm4, %v945_v42 }
 0x5a7   :  { %v861_v49 = vpop.f32.mrf.mxu0  ;;  %1449 = vmatpush.msrb.mxu2 %v2518_v4  ;;  %v917_v4 = vpop.f32.mrf.mxu1 }
 0x5a8   :  { %v909_v51 = vadd.f32 %v908_v32, %v861_v49 }
 0x5a9   :  { %1450 = vmatpush.msrb.mxu2 %v2524_v5 }
 0x5aa   :  { %v936_v52 = vadd.f32 %v909_v51, %v2580_v41 }
 0x5ab   :  { %1451 = vmatpush.msrb.mxu2 %v2530_v6 }
 0x5ac   :  { %v946_v54 = vmax.f32 %v936_v52, 0.0 }
 0x5ad   :  { %1452 = vmatpush.msrb.mxu2 %v2539_v7 }
 0x5ae   :  { %2066 = vmatmul.msk.f32.gmra.mxu2 %vm480_vm4, %v946_v54 }
 0x5af   :  { %v864_v0 = vpop.f32.mrf.mxu0  ;;  %1453 = vmatpush.msrb.mxu2 %v2546_v8  ;;  %v920_v8 = vpop.f32.mrf.mxu1 }
 0x5b0   :  { %v912_v1 = vadd.f32 %v911_v38, %v864_v0 }
 0x5b1   :  { %1454 = vmatpush.msrb.mxu2 %v2552_v9 }
 0x5b2   :  { %v937_v2 = vadd.f32 %v912_v1, %v2584_v50 }
 0x5b3   :  { %1455 = vmatpush.msrb.mxu2 %v2560_v10 }
 0x5b4   :  { %v947_v3 = vmax.f32 %v937_v2, 0.0 }
 0x5b5   :  { %1456 = vmatpush.msrb.mxu2 %v2566_v11 }
 0x5b6   :  { %2067 = vmatmul.msk.f32.gmra.mxu2 %vm480_vm4, %v947_v3 }
 0x5b7   :  { %v867_v5 = vpop.f32.mrf.mxu0  ;;  %v923_v11 = vpop.f32.mrf.mxu1 }
 0x5b8   :  { %v915_v6 = vadd.f32 %v914_v53, %v867_v5 }
 0x5ba   :  { %v938_v7 = vadd.f32 %v915_v6, %v2588_v61 }
 0x5bc   :  { %v948_v63 = vmax.f32 %v938_v7, 0.0 }
 0x5be   :  { %2068 = vmatmul.msk.f32.gmra.mxu2 %vm480_vm4, %v948_v63 }
 0x5bf   :  { %v870_v12 = vpop.f32.mrf.mxu0  ;;  %v926_v19 = vpop.f32.mrf.mxu1 }
 0x5c0   :  { %v918_v9 = vadd.f32 %v917_v4, %v870_v12 }
 0x5c2   :  { %v939_v40 = vadd.f32 %v918_v9, %v2592_v29 }
 0x5c4   :  { %v949_v35 = vmax.f32 %v939_v40, 0.0 }
 0x5c6   :  { %2069 = vmatmul.msk.f32.gmra.mxu2 %vm480_vm4, %v949_v35 }
 0x5c7   :  { %v873_v10 = vpop.f32.mrf.mxu0  ;;  %v929_v25 = vpop.f32.mrf.mxu1 }
 0x5c8   :  { %v921_v34 = vadd.f32 %v920_v8, %v873_v10  ;;  %v3261_v10 = vld [vmem:[#allocation9_spill] sm:$0xff] }
 0x5ca   :  { %v940_v33 = vadd.f32 %v921_v34, %v2576_v16  ;;  %v3262_v34 = vld [vmem:[#allocation10_spill] sm:$0xff] }
 0x5cc   :  { %v950_v45 = vmax.f32 %v940_v33, 0.0  ;;  %v3263_v33 = vld [vmem:[#allocation2_spill] sm:$0xff] }
 0x5ce   :  { %2070 = vmatmul.msk.f32.gmra.mxu2 %vm480_vm4, %v950_v45  ;;  %v3264_v45 = vld [vmem:[#allocation3_spill] sm:$0xff] }
 0x5cf   :  { %v876_v48 = vpop.f32.mrf.mxu0  ;;  %v932_v32 = vpop.f32.mrf.mxu1 }
 0x5d0   :  { %v924_v57 = vadd.f32 %v923_v11, %v876_v48  ;;  %v3265_v48 = vld [vmem:[#allocation4_spill] sm:$0xff] }
 0x5d2   :  { %v941_v13 = vadd.f32 %v924_v57, %v2580_v41 }
 0x5d4   :  { %v951_v20 = vmax.f32 %v941_v13, 0.0  ;;  %v3266_v13 = vld [vmem:[#allocation5_spill] sm:$0xff] }
 0x5d6   :  { %2071 = vmatmul.msk.f32.gmra.mxu2 %vm480_vm4, %v951_v20  ;;  %v3268_v20 = vld [vmem:[#allocation7_spill] sm:$0xff] }
 0x5d7   :  { %v879_v21 = vpop.f32.mrf.mxu0 }
 0x5d8   :  { %v927_v22 = vadd.f32 %v926_v19, %v879_v21  ;;  %v3267_v19 = vld [vmem:[#allocation6_spill] sm:$0xff]  ;;  %v3269_v21 = vld [vmem:[#allocation8_spill] sm:$0xff] }
 0x5da   :  { %v942_v23 = vadd.f32 %v927_v22, %v2584_v50 }
 0x5dc   :  { %v952_v24 = vmax.f32 %v942_v23, 0.0  ;;  %v3270_v23 = vld [vmem:[#allocation11_spill] sm:$0xff] }
 0x5de   :  { %2072 = vmatmul.msk.f32.gmra.mxu2 %vm480_vm4, %v952_v24 }
 0x5df   :  { %v882_v26 = vpop.f32.mrf.mxu0 }
 0x5e0   :  { %v930_v27 = vadd.f32 %v929_v25, %v882_v26 }
 0x5e2   :  { %v943_v28 = vadd.f32 %v930_v27, %v2588_v61 }
 0x5e4   :  { %v953_v31 = vmax.f32 %v943_v28, 0.0 }
 0x5e6   :  { %2073 = vmatmul.msk.f32.gmra.mxu2 %vm480_vm4, %v953_v31 }
 0x5e7   :  { %v885_v36 = vpop.f32.mrf.mxu0 }
 0x5e8   :  { %v933_v37 = vadd.f32 %v932_v32, %v885_v36 }
 0x5ea   :  { %v944_v38 = vadd.f32 %v933_v37, %v2592_v29 }
 0x5ec   :  { %v954_v39 = vmax.f32 %v944_v38, 0.0 }
 0x5ee   :  { %2074 = vmatmul.msk.f32.gmra.mxu2 %vm480_vm4, %v954_v39 }
 0x5ef   :  { %v1096_v26 = vpop.f32.mrf.mxu0 }
 0x5f7   :  { %v1099_v31 = vpop.f32.mrf.mxu0 }
 0x629   :  { %v1002_v42 = vpop.f32.mrf.mxu2 }
 0x62a   :  { %v1003_v35 = vadd.f32 %v2609_v55, %v1002_v42  ;;  %v1102_v42 = vpop.f32.mrf.mxu0 }
 0x631   :  { %v1005_v49 = vpop.f32.mrf.mxu2 }
 0x632   :  { %v1006_v40 = vadd.f32 %v2609_v55, %v1005_v49 }
 0x639   :  { %v1008_v51 = vpop.f32.mrf.mxu2 }
 0x63a   :  { %v1009_v9 = vadd.f32 %v2609_v55, %v1008_v51 }
 0x641   :  { %v1011_v52 = vpop.f32.mrf.mxu2 }
 0x642   :  { %v1012_v12 = vadd.f32 %v2609_v55, %v1011_v52  ;;  %v3271_v52 = vld [vmem:[#allocation12_spill] sm:$0xff] }
 0x649   :  { %v1014_v53 = vpop.f32.mrf.mxu2 }
 0x64a   :  { %v1015_v8 = vadd.f32 %v2609_v55, %v1014_v53 }
 0x651   :  { %v1017_v54 = vpop.f32.mrf.mxu2 }
 0x652   :  { %v1018_v63 = vadd.f32 %v2609_v55, %v1017_v54  ;;  %v3272_v54 = vld [vmem:[#allocation13_spill] sm:$0xff] }
 0x659   :  { %v1020_v0 = vpop.f32.mrf.mxu2 }
 0x65a   :  { %v1021_v7 = vadd.f32 %v2609_v55, %v1020_v0  ;;  %v3273_v0 = vld [vmem:[#allocation14_spill] sm:$0xff] }
 0x661   :  { %v1023_v1 = vpop.f32.mrf.mxu2 }
 0x662   :  { %v1024_v6 = vadd.f32 %v2609_v55, %v1023_v1  ;;  %v1105_v1 = vpop.f32.mrf.mxu0 }
 0x669   :  { %v1026_v2 = vpop.f32.mrf.mxu2 }
 0x66a   :  { %v1027_v5 = vadd.f32 %v2609_v55, %v1026_v2  ;;  %v3274_v2 = vld [vmem:[#allocation15_spill] sm:$0xff] }
 0x671   :  { %v1029_v3 = vpop.f32.mrf.mxu2 }
 0x672   :  { %v1030_v4 = vadd.f32 %v2609_v55, %v1029_v3 }
 0x674   :  { %1038 = vmatpush.msra.mxu3 %v1030_v4 }
 0x676   :  { %1039 = vmatpush.msra.mxu3 %v1027_v5  ;;  %v1108_v5 = vpop.f32.mrf.mxu0 }
 0x678   :  { %1040 = vmatpush.msra.mxu3 %v1024_v6 }
 0x67a   :  { %1041 = vmatpush.msra.mxu3 %v1021_v7 }
 0x67c   :  { %1042 = vmatpush.msra.mxu3 %v1018_v63 }
 0x67e   :  { %1043 = vmatpush.msra.mxu3 %v1015_v8 }
 0x680   :  { %1044 = vmatpush.msra.mxu3 %v1012_v12 }
 0x682   :  { %1045 = vmatpush.msra.mxu3 %v1009_v9 }
 0x684   :  { %1046 = vmatpush.msra.mxu3 %v1006_v40 }
 0x686   :  { %1047 = vmatpush.msra.mxu3 %v1003_v35 }
 0x687   :  { %2075 = vmatmul.msk.f32.vlgmr.msra.gmra.mxu3 %vm558_vm5, %v2624_v30 }
 0x68f   :  { %2076 = vmatmul.msk.f32.gmra.mxu3 %vm558_vm5, %v2653_v43 }
 0x697   :  { %2077 = vmatmul.msk.f32.gmra.mxu3 %vm558_vm5, %v2679_v47 }
 0x69f   :  { %2078 = vmatmul.msk.f32.gmra.mxu3 %vm558_vm5, %v3261_v10 }
 0x6a7   :  { %2079 = vmatmul.msk.f32.gmra.mxu3 %vm558_vm5, %v3262_v34 }
 0x70a   :  { %v1049_v11 = vpop.f32.mrf.mxu3 }
 0x70b   :  { %2085 = vmatmul.msk.f32.vlgmr.msra.gmra.mxu1 %vm480_vm4, %v1049_v11 }
 0x70c   :  { %1590 = vmatpush.msra.mxu1 %v3263_v33 }
 0x70e   :  { %1591 = vmatpush.msra.mxu1 %v3264_v45 }
 0x710   :  { %1592 = vmatpush.msra.mxu1 %v3265_v48 }
 0x712   :  { %v1052_v57 = vpop.f32.mrf.mxu3  ;;  %1593 = vmatpush.msra.mxu1 %v3266_v13 }
 0x713   :  { %2086 = vmatmul.msk.f32.gmra.mxu1 %vm480_vm4, %v1052_v57 }
 0x714   :  { %1594 = vmatpush.msra.mxu1 %v3267_v19 }
 0x716   :  { %1595 = vmatpush.msra.mxu1 %v3268_v20 }
 0x718   :  { %1596 = vmatpush.msra.mxu1 %v3269_v21 }
 0x71a   :  { %v1055_v22 = vpop.f32.mrf.mxu3  ;;  %1597 = vmatpush.msra.mxu1 %v3270_v23  ;;  %v2215_v23 = vld [vmem:[%s3225_s1 + $0x20] sm:$0xff] }
 0x71b   :  { %2087 = vmatmul.msk.f32.gmra.mxu1 %vm480_vm4, %v1055_v22 }
 0x722   :  { %v1058_v24 = vpop.f32.mrf.mxu3 }
 0x723   :  { %2088 = vmatmul.msk.f32.gmra.mxu1 %vm480_vm4, %v1058_v24  ;;  %v2216_v24 = vld [vmem:[%s3225_s1 + $0x28] sm:$0xff] }
 0x72a   :  { %v1061_v25 = vpop.f32.mrf.mxu3 }
 0x72b   :  { %2089 = vmatmul.msk.f32.gmra.mxu1 %vm480_vm4, %v1061_v25  ;;  %v2217_v25 = vld [vmem:[%s3225_s1 + $0x30] sm:$0xff] }
 0x788   :  { %v1143_v27 = vpop.f32.mrf.mxu1 }
 0x789   :  { %v1144_v28 = vadd.f32 %v1143_v27, %v1096_v26  ;;  %v2218_v26 = vld [vmem:[%s3225_s1 + $0x38] sm:$0xff]  ;;  %v2219_v27 = vld [vmem:[%s3225_s1 + $0x40] sm:$0xff] }
 0x78b   :  { %v1158_v32 = vadd.f32 %v2780_v14, %v1144_v28  ;;  %v2220_v28 = vld [vmem:[%s3225_s1 + $0x48] sm:$0xff] }
 0x78d   :  { %v1163_v36 = vmax.f32 %v1158_v32, 0.0 }
 0x78f   :  { %2090 = vmatmul.msk.f32.vlgmr.msra.gmra.mxu2 %vm480_vm4, %v1163_v36 }
 0x790   :  { %v1146_v37 = vpop.f32.mrf.mxu1  ;;  %1647 = vmatpush.msra.mxu2 %v2712_v58 }
 0x791   :  { %v1147_v38 = vadd.f32 %v1146_v37, %v1099_v31 }
 0x792   :  { %1648 = vmatpush.msra.mxu2 %v2717_v59 }
 0x793   :  { %v1159_v39 = vadd.f32 %v2780_v14, %v1147_v38 }
 0x794   :  { %1649 = vmatpush.msra.mxu2 %v2724_v60 }
 0x795   :  { %v1164_v49 = vmax.f32 %v1159_v39, 0.0 }
 0x796   :  { %1650 = vmatpush.msra.mxu2 %v2731_v62 }
 0x797   :  { %2091 = vmatmul.msk.f32.gmra.mxu2 %vm480_vm4, %v1164_v49 }
 0x798   :  { %v1149_v51 = vpop.f32.mrf.mxu1  ;;  %1651 = vmatpush.msra.mxu2 %v3271_v52 }
 0x799   :  { %v1150_v53 = vadd.f32 %v1149_v51, %v1102_v42 }
 0x79a   :  { %1652 = vmatpush.msra.mxu2 %v3272_v54 }
 0x79b   :  { %v1160_v58 = vadd.f32 %v2780_v14, %v1150_v53 }
 0x79c   :  { %1653 = vmatpush.msra.mxu2 %v3273_v0 }
 0x79d   :  { %v1165_v59 = vmax.f32 %v1160_v58, 0.0 }
 0x79e   :  { %1654 = vmatpush.msra.mxu2 %v3274_v2 }
 0x79f   :  { %2092 = vmatmul.msk.f32.gmra.mxu2 %vm480_vm4, %v1165_v59 }
 0x7a0   :  { %v1152_v60 = vpop.f32.mrf.mxu1 }
 0x7a1   :  { %v1153_v62 = vadd.f32 %v1152_v60, %v1105_v1 }
 0x7a3   :  { %v1161_v3 = vadd.f32 %v2780_v14, %v1153_v62 }
 0x7a5   :  { %v1166_v4 = vmax.f32 %v1161_v3, 0.0 }
 0x7a7   :  { %2093 = vmatmul.msk.f32.gmra.mxu2 %vm480_vm4, %v1166_v4 }
 0x7a8   :  { %v1155_v6 = vpop.f32.mrf.mxu1 }
 0x7a9   :  { %v1156_v7 = vadd.f32 %v1155_v6, %v1108_v5 }
 0x7ab   :  { %v1162_v63 = vadd.f32 %v2780_v14, %v1156_v7 }
 0x7ad   :  { %v1167_v8 = vmax.f32 %v1162_v63, 0.0 }
 0x7af   :  { %2094 = vmatmul.msk.f32.gmra.mxu2 %vm480_vm4, %v1167_v8 }
 0x812   :  { %v1200_v12 = vpop.f32.mrf.mxu2 }
 0x813   :  { %v1201_v20 = vadd.f32 %v2803_v44, %v1200_v12 }
 0x81a   :  { %v1203_v9 = vpop.f32.mrf.mxu2 }
 0x81b   :  { %v1204_v13 = vadd.f32 %v2803_v44, %v1203_v9 }
 0x81d   :  { %v2988_v22 = vadd.f32 %v1204_v13, %v2822_v17  ;;  %v2213_v17 = vld [vmem:[%s3225_s1 + $0x10] sm:$0xff] }
 0x822   :  { %v1206_v40 = vpop.f32.mrf.mxu2 }
 0x823   :  { %v1207_v48 = vadd.f32 %v2803_v44, %v1206_v40 }
 0x825   :  { %v2984_v21 = vadd.f32 %v1207_v48, %v2818_v46  ;;  %v2212_v46 = vld [vmem:[%s3225_s1 + $0x8] sm:$0xff] }
 0x82a   :  { %v1209_v35 = vpop.f32.mrf.mxu2 }
 0x82b   :  { %v1210_v33 = vadd.f32 %v2803_v44, %v1209_v35 }
 0x82d   :  { %v2979_v19 = vadd.f32 %v1210_v33, %v2813_v15  ;;  %v2211_v15 = vld [vmem:[%s3225_s1] sm:$0xff] }
 0x832   :  { %v1212_v11 = vpop.f32.mrf.mxu2 }
 0x833   :  { %v1213_v45 = vadd.f32 %v2803_v44, %v1212_v11 }
 0x835   :  { %v2975_v57 = vadd.f32 %v1213_v45, %v2809_v56  ;;  %v2992_v56 = vadd.f32 %v1201_v20, %v2826_v18  ;;  %v2214_v18 = vld [vmem:[%s3225_s1 + $0x18] sm:$0xff] }
 0x837   :  { %1231 = vmatpush.msrb.mxu3 %v2975_v57 }
 0x839   :  { %1232 = vmatpush.msrb.mxu3 %v2979_v19 }
 0x83b   :  { %1233 = vmatpush.msrb.mxu3 %v2984_v21 }
 0x83d   :  { %1234 = vmatpush.msrb.mxu3 %v2988_v22 }
 0x83f   :  { %1235 = vmatpush.msrb.mxu3 %v2992_v56 }
 0x840   :  { %2095 = vmatmul.msk.f32.vlgmr.msrb.gmra.mxu3 %vm256_vm1, %v2211_v15 }
 0x848   :  { %2096 = vmatmul.msk.f32.gmra.mxu3 %vm256_vm1, %v2212_v46 }
 0x850   :  { %2097 = vmatmul.msk.f32.gmra.mxu3 %vm256_vm1, %v2213_v17 }
 0x858   :  { %2098 = vmatmul.msk.f32.gmra.mxu3 %vm256_vm1, %v2214_v18 }
 0x860   :  { %2099 = vmatmul.msk.f32.gmra.mxu3 %vm256_vm1, %v2215_v23 }
 0x868   :  { %2100 = vmatmul.msk.f32.gmra.mxu3 %vm256_vm1, %v2216_v24 }
 0x870   :  { %2101 = vmatmul.msk.f32.gmra.mxu3 %vm256_vm1, %v2217_v25 }
 0x878   :  { %2102 = vmatmul.msk.f32.gmra.mxu3 %vm256_vm1, %v2218_v26 }
 0x880   :  { %2103 = vmatmul.msk.f32.gmra.mxu3 %vm256_vm1, %v2219_v27 }
 0x888   :  { %2104 = vmatmul.msk.f32.gmra.mxu3 %vm256_vm1, %v2220_v28 }
 0x8c3   :  { %v1237_v31 = vpop.f32.mrf.mxu3 }
 0x8c4   :  { %2115 = vmatmul.msk.f32.vlgmr.msrb.gmra.mxu1 %vm334_vm3, %v1237_v31 }
 0x8cb   :  { %v1240_v32 = vpop.f32.mrf.mxu3 }
 0x8cc   :  { %2116 = vmatmul.msk.f32.gmra.mxu1 %vm334_vm3, %v1240_v32 }
 0x8d3   :  { %v1243_v36 = vpop.f32.mrf.mxu3 }
 0x8d4   :  { %2117 = vmatmul.msk.f32.gmra.mxu1 %vm334_vm3, %v1243_v36 }
 0x8db   :  { %v1246_v37 = vpop.f32.mrf.mxu3 }
 0x8dc   :  { %2118 = vmatmul.msk.f32.gmra.mxu1 %vm334_vm3, %v1246_v37 }
 0x8e3   :  { %v1249_v38 = vpop.f32.mrf.mxu3 }
 0x8e4   :  { %2119 = vmatmul.msk.f32.gmra.mxu1 %vm334_vm3, %v1249_v38 }
 0x8eb   :  { %v1252_v39 = vpop.f32.mrf.mxu3 }
 0x8ec   :  { %2105 = vmatmul.msk.f32.vlgmr.msrb.gmra.mxu0 %vm334_vm3, %v1252_v39  ;;  %2120 = vmatmul.msk.f32.gmra.mxu1 %vm334_vm3, %v1252_v39 }
 0x8f3   :  { %v1255_v42 = vpop.f32.mrf.mxu3 }
 0x8f4   :  { %2106 = vmatmul.msk.f32.gmra.mxu0 %vm334_vm3, %v1255_v42  ;;  %2121 = vmatmul.msk.f32.gmra.mxu1 %vm334_vm3, %v1255_v42 }
 0x8fb   :  { %v1258_v49 = vpop.f32.mrf.mxu3 }
 0x8fc   :  { %2107 = vmatmul.msk.f32.gmra.mxu0 %vm334_vm3, %v1258_v49  ;;  %2122 = vmatmul.msk.f32.gmra.mxu1 %vm334_vm3, %v1258_v49 }
 0x903   :  { %v1261_v51 = vpop.f32.mrf.mxu3 }
 0x904   :  { %2108 = vmatmul.msk.f32.gmra.mxu0 %vm334_vm3, %v1261_v51  ;;  %2123 = vmatmul.msk.f32.gmra.mxu1 %vm334_vm3, %v1261_v51 }
 0x90b   :  { %v1264_v52 = vpop.f32.mrf.mxu3 }
 0x90c   :  { %2109 = vmatmul.msk.f32.gmra.mxu0 %vm334_vm3, %v1264_v52  ;;  %2124 = vmatmul.msk.f32.gmra.mxu1 %vm334_vm3, %v1264_v52 }
 0x914   :  { %2110 = vmatmul.msk.f32.gmra.mxu0 %vm334_vm3, %v1237_v31 }
 0x91c   :  { %2111 = vmatmul.msk.f32.gmra.mxu0 %vm334_vm3, %v1240_v32 }
 0x924   :  { %2112 = vmatmul.msk.f32.gmra.mxu0 %vm334_vm3, %v1243_v36 }
 0x92c   :  { %2113 = vmatmul.msk.f32.gmra.mxu0 %vm334_vm3, %v1246_v37 }
 0x934   :  { %2114 = vmatmul.msk.f32.gmra.mxu0 %vm334_vm3, %v1249_v38 }
 0x93c   :  { %2140 = vmatmul.msk.f32.vlgmr.msra.gmra.mxu0 %vm334_vm3, %v2992_v56 }
 0x941   :  { %v1361_v53 = vpop.f32.mrf.mxu1 }
 0x944   :  { %2141 = vmatmul.msk.f32.gmra.mxu0 %vm334_vm3, %v2988_v22 }
 0x949   :  { %v1364_v54 = vpop.f32.mrf.mxu1 }
 0x94c   :  { %2142 = vmatmul.msk.f32.gmra.mxu0 %vm334_vm3, %v2984_v21 }
 0x951   :  { %v1367_v59 = vpop.f32.mrf.mxu1 }
 0x954   :  { %2143 = vmatmul.msk.f32.gmra.mxu0 %vm334_vm3, %v2979_v19 }
 0x959   :  { %v1370_v4 = vpop.f32.mrf.mxu1 }
 0x95c   :  { %2144 = vmatmul.msk.f32.gmra.mxu0 %vm334_vm3, %v2975_v57 }
 0x961   :  { %v1373_v12 = vpop.f32.mrf.mxu1 }
 0x969   :  { %v1314_v58 = vpop.f32.mrf.mxu0  ;;  %v1376_v33 = vpop.f32.mrf.mxu1 }
 0x96a   :  { %v1362_v0 = vadd.f32 %v1361_v53, %v1314_v58 }
 0x96c   :  { %v1391_v1 = vadd.f32 %v1362_v0, %v2576_v16 }
 0x96e   :  { %v1401_v2 = vmax.f32 %v1391_v1, 0.0 }
 0x970   :  { %2125 = vmatmul.msk.f32.vlgmr.msrb.gmra.mxu2 %vm480_vm4, %v1401_v2 }
 0x971   :  { %v1317_v60 = vpop.f32.mrf.mxu0  ;;  %v1379_v17 = vpop.f32.mrf.mxu1 }
 0x972   :  { %v1365_v62 = vadd.f32 %v1364_v54, %v1317_v60 }
 0x974   :  { %v1392_v3 = vadd.f32 %v1365_v62, %v2580_v41 }
 0x976   :  { %v1402_v5 = vmax.f32 %v1392_v3, 0.0 }
 0x978   :  { %2126 = vmatmul.msk.f32.gmra.mxu2 %vm480_vm4, %v1402_v5 }
 0x979   :  { %v1320_v6 = vpop.f32.mrf.mxu0  ;;  %v1382_v27 = vpop.f32.mrf.mxu1 }
 0x97a   :  { %v1368_v7 = vadd.f32 %v1367_v59, %v1320_v6  ;;  %v2221_v6 = vld [vmem:[%s3224_s7 + $0x3] ss:$0 sm:$0xff] }
 0x97c   :  { %v1393_v63 = vadd.f32 %v1368_v7, %v2584_v50 }
 0x97e   :  { %v1403_v8 = vmax.f32 %v1393_v63, 0.0 }
 0x980   :  { %2127 = vmatmul.msk.f32.gmra.mxu2 %vm480_vm4, %v1403_v8 }
 0x981   :  { %v1323_v9 = vpop.f32.mrf.mxu0  ;;  %v1385_v38 = vpop.f32.mrf.mxu1 }
 0x982   :  { %v1371_v40 = vadd.f32 %v1370_v4, %v1323_v9 }
 0x984   :  { %v1394_v35 = vadd.f32 %v1371_v40, %v2588_v61 }
 0x986   :  { %v1404_v11 = vmax.f32 %v1394_v35, 0.0 }
 0x988   :  { %2128 = vmatmul.msk.f32.gmra.mxu2 %vm480_vm4, %v1404_v11 }
 0x989   :  { %v1326_v45 = vpop.f32.mrf.mxu0 }
 0x98a   :  { %v1374_v48 = vadd.f32 %v1373_v12, %v1326_v45 }
 0x98c   :  { %v1395_v13 = vadd.f32 %v1374_v48, %v2592_v29 }
 0x98e   :  { %v1405_v20 = vmax.f32 %v1395_v13, 0.0 }
 0x990   :  { %2129 = vmatmul.msk.f32.gmra.mxu2 %vm480_vm4, %v1405_v20  ;;  %v72_v20 = vld [vmem:[%s3222_s6 + $0x158] sm:$0xff] }
 0x991   :  { %v1329_v15 = vpop.f32.mrf.mxu0 }
 0x992   :  { %v1377_v46 = vadd.f32 %v1376_v33, %v1329_v15  ;;  %v76_v15 = vld [vmem:[%s3222_s6 + $0x178] sm:$0xff] }
 0x993   :  { %1737 = vmatpush.msrb.mxu0 %v76_v15 }
 0x994   :  { %v1396_v18 = vadd.f32 %v1377_v46, %v2576_v16 }
 0x996   :  { %v1406_v23 = vmax.f32 %v1396_v18, 0.0 }
 0x998   :  { %2130 = vmatmul.msk.f32.gmra.mxu2 %vm480_vm4, %v1406_v23 }
 0x999   :  { %v1332_v24 = vpop.f32.mrf.mxu0 }
 0x99a   :  { %v1380_v25 = vadd.f32 %v1379_v17, %v1332_v24 }
 0x99c   :  { %v1397_v26 = vadd.f32 %v1380_v25, %v2580_v41  ;;  %v1388_v41 = vpop.f32.mrf.mxu1 }
 0x99e   :  { %v1407_v28 = vmax.f32 %v1397_v26, 0.0 }
 0x9a0   :  { %2131 = vmatmul.msk.f32.gmra.mxu2 %vm480_vm4, %v1407_v28 }
 0x9a1   :  { %v1335_v31 = vpop.f32.mrf.mxu0 }
 0x9a2   :  { %v1383_v32 = vadd.f32 %v1382_v27, %v1335_v31 }
 0x9a4   :  { %v1398_v36 = vadd.f32 %v1383_v32, %v2584_v50 }
 0x9a6   :  { %v1408_v37 = vmax.f32 %v1398_v36, 0.0 }
 0x9a8   :  { %2132 = vmatmul.msk.f32.gmra.mxu2 %vm480_vm4, %v1408_v37 }
 0x9a9   :  { %v1338_v16 = vpop.f32.mrf.mxu0 }
 0x9aa   :  { %v1386_v39 = vadd.f32 %v1385_v38, %v1338_v16 }
 0x9ac   :  { %v1399_v42 = vadd.f32 %v1386_v39, %v2588_v61 }
 0x9ae   :  { %v1409_v49 = vmax.f32 %v1399_v42, 0.0 }
 0x9b0   :  { %2133 = vmatmul.msk.f32.gmra.mxu2 %vm480_vm4, %v1409_v49 }
 0x9b1   :  { %v1341_v51 = vpop.f32.mrf.mxu0 }
 0x9b2   :  { %v1389_v52 = vadd.f32 %v1388_v41, %v1341_v51  ;;  %v71_v51 = vld [vmem:[%s3222_s6 + $0x150] sm:$0xff] }
 0x9b4   :  { %v1400_v53 = vadd.f32 %v1389_v52, %v2592_v29  ;;  %v75_v52 = vld [vmem:[%s3222_s6 + $0x170] sm:$0xff] }
 0x9b5   :  { %1738 = vmatpush.msrb.mxu0 %v75_v52 }
 0x9b6   :  { %v1410_v54 = vmax.f32 %v1400_v53, 0.0  ;;  %v70_v53 = vld [vmem:[%s3222_s6 + $0x148] sm:$0xff] }
 0x9b8   :  { %2134 = vmatmul.msk.f32.gmra.mxu2 %vm480_vm4, %v1410_v54  ;;  %v69_v54 = vld [vmem:[%s3222_s6 + $0x140] sm:$0xff] }
 0x9f3   :  { %v1458_v50 = vpop.f32.mrf.mxu2 }
 0x9f4   :  { %v1459_v35 = vadd.f32 %v2221_v6, %v1458_v50  ;;  %v73_v50 = vld [vmem:[%s3222_s6 + $0x160] sm:$0xff] }
 0x9fb   :  { %v1461_v58 = vpop.f32.mrf.mxu2 }
 0x9fc   :  { %v1462_v40 = vadd.f32 %v2221_v6, %v1461_v58 }
 0xa03   :  { %v1464_v0 = vpop.f32.mrf.mxu2 }
 0xa04   :  { %v1465_v9 = vadd.f32 %v2221_v6, %v1464_v0 }
 0xa0b   :  { %v1467_v59 = vpop.f32.mrf.mxu2 }
 0xa0c   :  { %v1468_v12 = vadd.f32 %v2221_v6, %v1467_v59 }
 0xa13   :  { %v1470_v1 = vpop.f32.mrf.mxu2 }
 0xa14   :  { %v1471_v8 = vadd.f32 %v2221_v6, %v1470_v1 }
 0xa1b   :  { %v1473_v2 = vpop.f32.mrf.mxu2 }
 0xa1c   :  { %v1474_v63 = vadd.f32 %v2221_v6, %v1473_v2 }
 0xa23   :  { %v1476_v60 = vpop.f32.mrf.mxu2 }
 0xa24   :  { %v1477_v7 = vadd.f32 %v2221_v6, %v1476_v60 }
 0xa2b   :  { %v1479_v62 = vpop.f32.mrf.mxu2 }
 0xa2c   :  { %v1480_v29 = vadd.f32 %v2609_v55, %v1479_v62 }
 0xa33   :  { %v1482_v61 = vpop.f32.mrf.mxu2 }
 0xa34   :  { %v1483_v5 = vadd.f32 %v2609_v55, %v1482_v61 }
 0xa3b   :  { %v1485_v3 = vpop.f32.mrf.mxu2 }
 0xa3c   :  { %v1486_v4 = vadd.f32 %v2609_v55, %v1485_v3 }
 0xa3e   :  { %1494 = vmatpush.msra.mxu3 %v1486_v4 }
 0xa40   :  { %1495 = vmatpush.msra.mxu3 %v1483_v5 }
 0xa42   :  { %1496 = vmatpush.msra.mxu3 %v1480_v29 }
 0xa44   :  { %1497 = vmatpush.msra.mxu3 %v1477_v7 }
 0xa46   :  { %1498 = vmatpush.msra.mxu3 %v1474_v63 }
 0xa48   :  { %1499 = vmatpush.msra.mxu3 %v1471_v8 }
 0xa4a   :  { %1500 = vmatpush.msra.mxu3 %v1468_v12 }
 0xa4c   :  { %1501 = vmatpush.msra.mxu3 %v1465_v9 }
 0xa4e   :  { %1502 = vmatpush.msra.mxu3 %v1462_v40 }
 0xa50   :  { %1503 = vmatpush.msra.mxu3 %v1459_v35 }
 0xa51   :  { %2135 = vmatmul.msk.f32.vlgmr.msra.gmra.mxu3 %vm558_vm5, %v2624_v30 }
 0xa52   :  { %1704 = vmatpush.msrb.mxu3 %v72_v20 }
 0xa54   :  { %1705 = vmatpush.msrb.mxu3 %v71_v51 }
 0xa56   :  { %1706 = vmatpush.msrb.mxu3 %v70_v53 }
 0xa58   :  { %1707 = vmatpush.msrb.mxu3 %v69_v54 }
 0xa59   :  { %2136 = vmatmul.msk.f32.gmra.mxu3 %vm558_vm5, %v2653_v43 }
 0xa61   :  { %2137 = vmatmul.msk.f32.gmra.mxu3 %vm558_vm5, %v2679_v47  ;;  %v1552_v47 = vpop.f32.mrf.mxu0 }
 0xa69   :  { %2138 = vmatmul.msk.f32.gmra.mxu3 %vm558_vm5, %v3261_v10  ;;  %v1555_v48 = vpop.f32.mrf.mxu0 }
 0xa71   :  { %2139 = vmatmul.msk.f32.gmra.mxu3 %vm558_vm5, %v3262_v34  ;;  %v1558_v23 = vpop.f32.mrf.mxu0 }
 0xa79   :  { %v1561_v31 = vpop.f32.mrf.mxu0 }
 0xa81   :  { %v1564_v16 = vpop.f32.mrf.mxu0 }
 0xad4   :  { %v1505_v55 = vpop.f32.mrf.mxu3 }
 0xad5   :  { %2145 = vmatmul.msk.f32.vlgmr.msra.gmra.mxu1 %vm480_vm4, %v1505_v55 }
 0xadc   :  { %v1508_v11 = vpop.f32.mrf.mxu3 }
 0xadd   :  { %2146 = vmatmul.msk.f32.gmra.mxu1 %vm480_vm4, %v1508_v11 }
 0xae4   :  { %v1511_v33 = vpop.f32.mrf.mxu3 }
 0xae5   :  { %2147 = vmatmul.msk.f32.gmra.mxu1 %vm480_vm4, %v1511_v33 }
 0xaec   :  { %v1514_v30 = vpop.f32.mrf.mxu3 }
 0xaed   :  { %2148 = vmatmul.msk.f32.gmra.mxu1 %vm480_vm4, %v1514_v30 }
 0xaf4   :  { %v1517_v43 = vpop.f32.mrf.mxu3 }
 0xaf5   :  { %2149 = vmatmul.msk.f32.gmra.mxu1 %vm480_vm4, %v1517_v43 }
 0xb52   :  { %v1599_v10 = vpop.f32.mrf.mxu1 }
 0xb53   :  { %v1600_v45 = vadd.f32 %v1599_v10, %v1552_v47 }
 0xb55   :  { %v1614_v34 = vadd.f32 %v2780_v14, %v1600_v45 }
 0xb57   :  { %v1619_v13 = vmax.f32 %v1614_v34, 0.0 }
 0xb59   :  { %2150 = vmatmul.msk.f32.vlgmr.msra.gmra.mxu2 %vm480_vm4, %v1619_v13 }
 0xb5a   :  { %v1602_v46 = vpop.f32.mrf.mxu1 }
 0xb5b   :  { %v1603_v17 = vadd.f32 %v1602_v46, %v1555_v48 }
 0xb5d   :  { %v1615_v18 = vadd.f32 %v2780_v14, %v1603_v17 }
 0xb5f   :  { %v1620_v24 = vmax.f32 %v1615_v18, 0.0 }
 0xb61   :  { %2151 = vmatmul.msk.f32.gmra.mxu2 %vm480_vm4, %v1620_v24 }
 0xb62   :  { %v1605_v25 = vpop.f32.mrf.mxu1 }
 0xb63   :  { %v1606_v26 = vadd.f32 %v1605_v25, %v1558_v23 }
 0xb65   :  { %v1616_v27 = vadd.f32 %v2780_v14, %v1606_v26 }
 0xb67   :  { %v1621_v28 = vmax.f32 %v1616_v27, 0.0 }
 0xb69   :  { %2152 = vmatmul.msk.f32.gmra.mxu2 %vm480_vm4, %v1621_v28 }
 0xb6a   :  { %v1608_v32 = vpop.f32.mrf.mxu1 }
 0xb6b   :  { %v1609_v36 = vadd.f32 %v1608_v32, %v1561_v31 }
 0xb6d   :  { %v1617_v37 = vadd.f32 %v2780_v14, %v1609_v36 }
 0xb6f   :  { %v1622_v38 = vmax.f32 %v1617_v37, 0.0  ;;  %v2189_v37 = vld [vmem:[%s3224_s7 + $0x7] ss:$0 sm:$0xff] }
 0xb71   :  { %2153 = vmatmul.msk.f32.gmra.mxu2 %vm480_vm4, %v1622_v38 }
 0xb72   :  { %v1611_v39 = vpop.f32.mrf.mxu1 }
 0xb73   :  { %v1612_v42 = vadd.f32 %v1611_v39, %v1564_v16 }
 0xb75   :  { %v1618_v49 = vadd.f32 %v2780_v14, %v1612_v42  ;;  %v74_v14 = vld [vmem:[%s3222_s6 + $0x168] sm:$0xff] }
 0xb76   :  { %1739 = vmatpush.msrb.mxu0 %v74_v14 }
 0xb77   :  { %v1623_v41 = vmax.f32 %v1618_v49, 0.0 }
 0xb78   :  { %1740 = vmatpush.msrb.mxu0 %v73_v50 }
 0xb79   :  { %2154 = vmatmul.msk.f32.gmra.mxu2 %vm480_vm4, %v1623_v41 }
 0xbdc   :  { %v1656_v58 = vpop.f32.mrf.mxu2 }
 0xbdd   :  { %v1657_v0 = vadd.f32 %v2803_v44, %v1656_v58 }
 0xbdf   :  { %v1671_v59 = vadd.f32 %v1657_v0, %v2992_v56 }
 0xbe1   :  { %2155 = vmatmul.msk.f32.vlgmr.msrb.gmra.mxu3 %vm334_vm3, %v1671_v59  ;;  %2160 = vmatmul.msk.f32.vlgmr.msrb.gmra.mxu0 %vm334_vm3, %v1671_v59 }
 0xbe4   :  { %v1659_v1 = vpop.f32.mrf.mxu2 }
 0xbe5   :  { %v1660_v2 = vadd.f32 %v2803_v44, %v1659_v1  ;;  %v1787_v1 = vld [vmem:[%s3227_s3] sm:$0xff] }
 0xbe7   :  { %v1672_v60 = vadd.f32 %v1660_v2, %v2988_v22  ;;  %v1788_v2 = vld [vmem:[%s3227_s3 + $0x8] sm:$0xff] }
 0xbe9   :  { %2156 = vmatmul.msk.f32.gmra.mxu3 %vm334_vm3, %v1672_v60  ;;  %2161 = vmatmul.msk.f32.gmra.mxu0 %vm334_vm3, %v1672_v60  ;;  %v1789_v60 = vld [vmem:[%s3227_s3 + $0x10] sm:$0xff] }
 0xbec   :  { %v1662_v62 = vpop.f32.mrf.mxu2 }
 0xbed   :  { %v1663_v61 = vadd.f32 %v2803_v44, %v1662_v62  ;;  %v1790_v62 = vld [vmem:[%s3227_s3 + $0x18] sm:$0xff] }
 0xbef   :  { %v1673_v3 = vadd.f32 %v1663_v61, %v2984_v21  ;;  %v1791_v61 = vld [vmem:[%s3227_s3 + $0x20] sm:$0xff] }
 0xbf1   :  { %2157 = vmatmul.msk.f32.gmra.mxu3 %vm334_vm3, %v1673_v3  ;;  %2162 = vmatmul.msk.f32.gmra.mxu0 %vm334_vm3, %v1673_v3  ;;  %v1792_v3 = vld [vmem:[%s3227_s3 + $0x28] sm:$0xff] }
 0xbf4   :  { %v1665_v56 = vpop.f32.mrf.mxu2 }
 0xbf5   :  { %v1666_v4 = vadd.f32 %v2803_v44, %v1665_v56  ;;  %v1793_v56 = vld [vmem:[%s3227_s3 + $0x30] sm:$0xff] }
 0xbf7   :  { %v1674_v5 = vadd.f32 %v1666_v4, %v2979_v19  ;;  %v2190_v19 = vld [vmem:[%s3224_s7 + $0x6] ss:$0 sm:$0xff]  ;;  %v1794_v4 = vld [vmem:[%s3227_s3 + $0x38] sm:$0xff] }
 0xbf9   :  { %2158 = vmatmul.msk.f32.gmra.mxu3 %vm334_vm3, %v1674_v5  ;;  %2163 = vmatmul.msk.f32.gmra.mxu0 %vm334_vm3, %v1674_v5 }
 0xbfc   :  { %v1668_v22 = vpop.f32.mrf.mxu2 }
 0xbfd   :  { %v1669_v29 = vadd.f32 %v2803_v44, %v1668_v22 }
 0xbff   :  { %v1675_v6 = vadd.f32 %v1669_v29, %v2975_v57 }
 0xc01   :  { %2159 = vmatmul.msk.f32.gmra.mxu3 %vm334_vm3, %v1675_v6  ;;  %2164 = vmatmul.msk.f32.gmra.mxu0 %vm334_vm3, %v1675_v6 }
 0xc5e   :  { %v1742_v63 = vpop.f32.mrf.mxu0 }
 0xc5f   :  { %v1743_v58 = vadd.f32 %v2189_v37, %v1742_v63 }
 0xc64   :  { %v1709_v21 = vpop.f32.mrf.mxu3 }
 0xc65   :  { %v1710_v11 = vadd.f32 %v2190_v19, %v1709_v21 }
 0xc66   :  { %v1745_v12 = vpop.f32.mrf.mxu0 }
 0xc67   :  { %v1757_v10 = vsub.f32 0.0, %v1710_v11  ;;  %v1746_v14 = vadd.f32 %v2189_v37, %v1745_v12 }
 0xc69   :  { %v1762_v20 = vmul.f32 1.442695, %v1757_v10  ;;  %v1862_v10 = vld [vmem:[%s3228_s4 + $0x10] sm:$0xff] }
 0xc6c   :  { %v1712_v7 = vpop.f32.mrf.mxu3 }
 0xc6d   :  { %v1713_v55 = vadd.f32 %v2190_v19, %v1712_v7 }
 0xc6e   :  { %v1748_v30 = vpop.f32.mrf.mxu0 }
 0xc6f   :  { %v1758_v33 = vsub.f32 0.0, %v1713_v55  ;;  %v1749_v51 = vadd.f32 %v2189_v37, %v1748_v30  ;;  %v1860_v55 = vld [vmem:[%s3228_s4] sm:$0xff] }
 0xc71   :  { %v1764_v34 = vmul.f32 1.442695, %v1758_v33  ;;  %v1863_v33 = vld [vmem:[%s3228_s4 + $0x18] sm:$0xff] }
 0xc74   :  { %v1715_v8 = vpop.f32.mrf.mxu3 }
 0xc75   :  { %v1716_v40 = vadd.f32 %v2190_v19, %v1715_v8 }
 0xc76   :  { %v1751_v17 = vpop.f32.mrf.mxu0 }
 0xc77   :  { %v1759_v57 = vsub.f32 0.0, %v1716_v40  ;;  %v1752_v42 = vadd.f32 %v2189_v37, %v1751_v17 }
 0xc79   :  { %v1766_v45 = vmul.f32 1.442695, %v1759_v57 }
 0xc7c   :  { %v1718_v9 = vpop.f32.mrf.mxu3 }
 0xc7d   :  { %v1719_v35 = vadd.f32 %v2190_v19, %v1718_v9 }
 0xc7e   :  { %v1754_v36 = vpop.f32.mrf.mxu0 }
 0xc7f   :  { %v1760_v44 = vsub.f32 0.0, %v1719_v35  ;;  %v1755_v16 = vadd.f32 %v2189_v37, %v1754_v36 }
 0xc81   :  { %v1768_v43 = vmul.f32 1.442695, %v1760_v44 }
 0xc83   :  { %2191 = vpow2.f32 %v1768_v43 }
 0xc84   :  { %v1721_v47 = vpop.f32.mrf.mxu3  ;;  %2193 = vpow2.f32 %v1766_v45 }
 0xc85   :  { %v1722_v48 = vadd.f32 %v2190_v19, %v1721_v47  ;;  %2195 = vpow2.f32 %v1764_v34  ;;  %v1861_v19 = vld [vmem:[%s3228_s4 + $0x8] sm:$0xff] }
 0xc87   :  { %v1761_v13 = vsub.f32 0.0, %v1722_v48 }
 0xc89   :  { %v1770_v15 = vmul.f32 1.442695, %v1761_v13  ;;  %v2192_v46 = vpop.eup %2191 }
 0xc8a   :  { %v2194_v18 = vpop.eup %2193  ;;  %v1775_v23 = vadd.f32 1.0, %v2192_v46 }
 0xc8b   :  { %2197 = vpow2.f32 %v1770_v15  ;;  %v2196_v24 = vpop.eup %2195  ;;  %v1774_v26 = vadd.f32 1.0, %v2194_v18  ;;  %v1930_v15 = vld [vmem:[%s3229_s5] sm:$0x3] }
 0xc8c   :  { %2199 = vpow2.f32 %v1762_v20  ;;  %v1773_v31 = vadd.f32 1.0, %v2196_v24 }
 0xc8d   :  { %2201 = vrcp.f32 %v1775_v23 }
 0xc91   :  { %v2198_v25 = vpop.eup %2197 }
 0xc92   :  { %v1776_v27 = vadd.f32 1.0, %v2198_v25  ;;  %v2200_v28 = vpop.eup %2199 }
 0xc93   :  { %v1772_v32 = vadd.f32 1.0, %v2200_v28  ;;  %v2202_v38 = vpop.eup %2201 }
 0xc94   :  { %2203 = vrcp.f32 %v1776_v27  ;;  %v1785_v52 = vmul.f32 %v2202_v38, %v1752_v42 }
 0xc95   :  { %2205 = vrcp.f32 %v1774_v26 }
 0xc96   :  { %2207 = vrcp.f32 %v1773_v31 }
 0xc97   :  { %2209 = vrcp.f32 %v1772_v32 }
 0xc9a   :  { %v2204_v39 = vpop.eup %2203 }
 0xc9b   :  { %v1786_v49 = vmul.f32 %v2204_v39, %v1755_v16  ;;  %v2206_v41 = vpop.eup %2205 }
 0xc9c   :  { %v2208_v53 = vpop.eup %2207  ;;  %v1784_v54 = vmul.f32 %v2206_v41, %v1749_v51 }
 0xc9d   :  { %1830 = vmatpush.msrb.mxu1 %v1786_v49  ;;  %v2210_v50 = vpop.eup %2209  ;;  %v1783_v0 = vmul.f32 %v2208_v53, %v1746_v14 }
 0xc9e   :  { %v1782_v59 = vmul.f32 %v2210_v50, %v1743_v58 }
 0xc9f   :  { %1831 = vmatpush.msrb.mxu1 %v1785_v52 }
 0xca1   :  { %1832 = vmatpush.msrb.mxu1 %v1784_v54 }
 0xca3   :  { %1833 = vmatpush.msrb.mxu1 %v1783_v0 }
 0xca5   :  { %1834 = vmatpush.msrb.mxu1 %v1782_v59 }
 0xca6   :  { %2165 = vmatmul.msk.f32.vlgmr.msrb.gmra.mxu1 %vm256_vm1, %v1787_v1 }
 0xcae   :  { %2166 = vmatmul.msk.f32.gmra.mxu1 %vm256_vm1, %v1788_v2 }
 0xcb6   :  { %2167 = vmatmul.msk.f32.gmra.mxu1 %vm256_vm1, %v1789_v60 }
 0xcbe   :  { %2168 = vmatmul.msk.f32.gmra.mxu1 %vm256_vm1, %v1790_v62 }
 0xcc6   :  { %2169 = vmatmul.msk.f32.gmra.mxu1 %vm256_vm1, %v1791_v61 }
 0xcce   :  { %2170 = vmatmul.msk.f32.gmra.mxu1 %vm256_vm1, %v1792_v3 }
 0xcd6   :  { %2171 = vmatmul.msk.f32.gmra.mxu1 %vm256_vm1, %v1793_v56 }
 0xcde   :  { %2172 = vmatmul.msk.f32.gmra.mxu1 %vm256_vm1, %v1794_v4 }
 0xd23   :  { %v1836_v5 = vpop.f32.mrf.mxu1 }
 0xd2b   :  { %v1839_v22 = vpop.f32.mrf.mxu1 }
 0xd33   :  { %v1842_v29 = vpop.f32.mrf.mxu1 }
 0xd3b   :  { %v1845_v6 = vpop.f32.mrf.mxu1 }
 0xd43   :  { %v1848_v21 = vpop.f32.mrf.mxu1 }
 0xd4b   :  { %v1851_v7 = vpop.f32.mrf.mxu1 }
 0xd53   :  { %v1854_v63 = vpop.f32.mrf.mxu1 }
 0xd5b   :  { %v1857_v8 = vpop.f32.mrf.mxu1 }
 0xd5c   :  { %2173 = vmatpush.xpose.msk.msrb.mxu2 %vm1864_vm6, %v1857_v8 }
 0xd60   :  { %2174 = vmatpush.xpose.msk.msrb.mxu2 %vm1864_vm6, %v1854_v63 }
 0xd64   :  { %2175 = vmatpush.xpose.msk.msrb.mxu2 %vm1864_vm6, %v1851_v7 }
 0xd68   :  { %2176 = vmatpush.xpose.msk.msrb.mxu2 %vm1864_vm6, %v1848_v21 }
 0xd6b   :  { %2177 = vmatmul.msk.f32.vlgmr.msrb.gmra.mxu2 %vm1864_vm6, %v1836_v5 }
 0xd73   :  { %2178 = vmatmul.msk.f32.gmra.mxu2 %vm1864_vm6, %v1839_v22 }
 0xd7b   :  { %2179 = vmatmul.msk.f32.gmra.mxu2 %vm1864_vm6, %v1842_v29 }
 0xd83   :  { %2180 = vmatmul.msk.f32.gmra.mxu2 %vm1864_vm6, %v1845_v6 }
 0xdee   :  { %v1906_v12 = vpop.f32.mrf.mxu2 }
 0xdef   :  { %v1907_v44 = vadd.f32 %v1906_v12, %v1860_v55 }
 0xdf1   :  { %v1918_v57 = vsel %vm334_vm3, %v1907_v44, -inf }
 0xdf6   :  { %v1909_v9 = vpop.f32.mrf.mxu2 }
 0xdf7   :  { %v1910_v40 = vadd.f32 %v1909_v9, %v1861_v19 }
 0xdf9   :  { %v1921_v35 = vsel %vm334_vm3, %v1910_v40, -inf }
 0xdfa   :  { %1922 = vmax.xlane.f32.xlu1 %v1921_v35 }
 0xdfe   :  { %v1912_v11 = vpop.f32.mrf.mxu2 }
 0xdff   :  { %v1913_v45 = vadd.f32 %v1912_v11, %v1862_v10 }
 0xe01   :  { %v1924_v48 = vsel %vm334_vm3, %v1913_v45, -inf }
 0xe02   :  { %1919 = vmax.xlane.f32.xlu1 %v1918_v57 }
 0xe06   :  { %v1915_v30 = vpop.f32.mrf.mxu2 }
 0xe07   :  { %v1916_v43 = vadd.f32 %v1915_v30, %v1863_v33 }
 0xe09   :  { %v1927_v47 = vsel %vm334_vm3, %v1916_v43, -inf }
 0xe0a   :  { %1928 = vmax.xlane.f32.xlu0 %v1927_v47 }
 0xe12   :  { %1925 = vmax.xlane.f32.xlu0 %v1924_v48 }
 0xe6d   :  { %v1923_v13 = vpop.xlane.xlu1 %1922 }
 0xe75   :  { %v1920_v46 = vpop.xlane.xlu1 %1919 }
 0xe7d   :  { %v1929_v34 = vpop.xlane.xlu0 %1928 }
 0xe7e   :  { %1946 = vmatpush.msra.mxu3 %v1929_v34 }
 0xe85   :  { %v1926_v20 = vpop.xlane.xlu0 %1925 }
 0xe86   :  { %1947 = vmatpush.msra.mxu3 %v1926_v20 }
 0xe88   :  { %1948 = vmatpush.msra.mxu3 %v1923_v13 }
 0xe8a   :  { %1949 = vmatpush.msra.mxu3 %v1920_v46 }
 0xe8b   :  { %2181 = vmatmul.msk.f32.vlgmr.msra.gmra.mxu3 %vm334_vm3, %v1930_v15 }
 0xf0e   :  { %v1951_v17 = vpop.f32.mrf.mxu3 }
 0xf0f   :  { %1955 = vst.msk [vmem:[%s3230_s8] sm:$0x3] %vm1954_vm7, %v1951_v17 }

</bundles_post_ra>
